<compile_context>
chip_gen: v7x
topology: tpu7x:2x2x1
jax: 0.10.0
libtpu: 0.0.40
codegen_flags: <defaults>
</compile_context>

<pallas_src>
import functools

import jax
import jax.numpy as jnp
from jax.experimental import pallas as pl
from jax.experimental.pallas import tpu as pltpu


# ----------------------------- Pallas kernels ------------------------------

def _conv_act_stats_kernel(p_ref, w_ref, b_ref, y_ref, stats_ref, *,
                           negative_slope, m_valid, tile_m):
    """Per-M-tile: conv matmul + bias + LeakyReLU, plus BN partial sums."""
    # MXU matmul (bf16 operands, f32 accumulation).
    y = jnp.dot(p_ref[...], w_ref[...], preferred_element_type=jnp.float32)
    y = y + b_ref[...]                          # (1, C_pad) broadcast over rows
    y = jnp.where(y >= 0, y, negative_slope * y)
    y_ref[...] = y.astype(y_ref.dtype)

    # Per-tile partial statistics for BatchNorm (mask rows past the true M so
    # zero-padded patch rows do not pollute the batch statistics).
    row = (jax.lax.broadcasted_iota(jnp.int32, (tile_m, 1), 0)
           + pl.program_id(0) * tile_m)
    ym = jnp.where(row < m_valid, y, 0.0)
    s = jnp.sum(ym, axis=0, keepdims=True)      # (1, C_pad)
    q = jnp.sum(ym * ym, axis=0, keepdims=True) # (1, C_pad)
    zeros = jnp.zeros((6, s.shape[1]), jnp.float32)
    stats_ref[...] = jnp.concatenate([s, q, zeros], axis=0)   # (8, C_pad)


def _bn_apply_kernel(y_ref, ss_ref, o_ref):
    """Per-M-tile: y * scale + shift with precomputed per-channel scale/shift."""
    ss = ss_ref[...]                 # (8, C_pad); row 0 = scale, row 1 = shift
    scale = ss[0:1, :]
    shift = ss[1:2, :]
    o_ref[...] = (y_ref[...] * scale + shift).astype(o_ref.dtype)


# ----------------------------- JAX glue ------------------------------------

def _triple(v):
    return (v, v, v) if isinstance(v, int) else tuple(v)


def _round_up(v, m):
    return ((v + m - 1) // m) * m


def _im2col_3d(x, ksize, stride, padding, dilation):
    """x: (N, Cin, D, H, W) -> patches (N*Do*Ho*Wo, kd*kh*kw*Cin), tap-major.

    Built channels-last so the (N, Do, Ho, Wo, K) layout falls out directly
    (no transpose of the expanded array).
    """
    N, Cin, D, H, W = x.shape
    kd, kh, kw = ksize
    sd, sh, sw = stride
    pd, ph, pw = padding
    dd, dh, dw = dilation

    x_cl = jnp.transpose(x, (0, 2, 3, 4, 1))                    # NDHWC
    xp = jnp.pad(x_cl, ((0, 0), (pd, pd), (ph, ph), (pw, pw), (0, 0)))
    Do = (D + 2 * pd - dd * (kd - 1) - 1) // sd + 1
    Ho = (H + 2 * ph - dh * (kh - 1) - 1) // sh + 1
    Wo = (W + 2 * pw - dw * (kw - 1) - 1) // sw + 1

    cols = []
    for a in range(kd):
        for b in range(kh):
            for c in range(kw):
                cols.append(xp[:,
                               a * dd: a * dd + (Do - 1) * sd + 1: sd,
                               b * dh: b * dh + (Ho - 1) * sh + 1: sh,
                               c * dw: c * dw + (Wo - 1) * sw + 1: sw,
                               :])                              # (N,Do,Ho,Wo,Cin)
    patches = jnp.concatenate(cols, axis=-1)                    # (N,Do,Ho,Wo,Kvol*Cin)
    K = kd * kh * kw * Cin
    return patches.reshape(N * Do * Ho * Wo, K), (Do, Ho, Wo)


@functools.partial(jax.jit, static_argnames=(
    "stride", "padding", "dilation", "negative_slope", "eps", "tile_m"))
def conv3_forward(x, weight, bias, gamma, beta, *, stride=1, padding=0,
                  dilation=1, negative_slope=0.2, eps=1e-5, tile_m=512):
    """Conv3 forward: Conv3d -> LeakyReLU(0.2) -> BatchNorm3d (bn_before=False).

    x:      (N, Cin, D, H, W)   NCDHW (PyTorch convention)
    weight: (Cout, Cin, kd, kh, kw)
    bias / gamma / beta: (Cout,)
    returns (N, Cout, Do, Ho, Wo)  float32
    """
    N, Cin, D, H, W = x.shape
    Cout = weight.shape[0]
    ksize = tuple(weight.shape[2:])
    stride, padding, dilation = _triple(stride), _triple(padding), _triple(dilation)

    # ---- im2col (channels-last, tap-major; K order matches transposed weight)
    patches, (Do, Ho, Wo) = _im2col_3d(x, ksize, stride, padding, dilation)
    M, K = patches.shape

    # ---- lane-dense padding: K and Cout to multiples of 128, M to TILE_M
    K_pad = _round_up(K, 128)
    C_pad = _round_up(Cout, 128)
    tile_m = max(8, _round_up(min(tile_m, _round_up(M, 8)), 8))
    M_pad = _round_up(M, tile_m)
    num_tiles = M_pad // tile_m

    patches_p = jnp.pad(patches, ((0, M_pad - M), (0, K_pad - K)))
    patches_p = patches_p.astype(jnp.bfloat16)                  # bf16 MXU operand

    w_mat = jnp.transpose(weight, (2, 3, 4, 1, 0)).reshape(K, Cout)  # (K, Cout)
    w_p = jnp.pad(w_mat, ((0, K_pad - K), (0, C_pad - Cout))).astype(jnp.bfloat16)

    b_p = jnp.pad(bias.reshape(1, Cout), ((0, 0), (0, C_pad - Cout)))
    g_p = jnp.pad(gamma, (0, C_pad - Cout))
    be_p = jnp.pad(beta, (0, C_pad - Cout))

    cparams = pltpu.CompilerParams(
        dimension_semantics=("parallel",),
        vmem_limit_bytes=32 << 20,    # headroom for v7x's 64 MiB physical VMEM
    )

    # ---- pass 1: conv + bias + LeakyReLU, per-tile BN partial sums ----------
    kernel1 = functools.partial(_conv_act_stats_kernel,
                                negative_slope=negative_slope,
                                m_valid=M, tile_m=tile_m)
    y_full, stats = pl.pallas_call(
        kernel1,
        out_shape=(jax.ShapeDtypeStruct((M_pad, C_pad), jnp.float32),
                   jax.ShapeDtypeStruct((num_tiles * 8, C_pad), jnp.float32)),
        grid=(num_tiles,),
        in_specs=[
            pl.BlockSpec((tile_m, K_pad), lambda i: (i, 0)),
            pl.BlockSpec((K_pad, C_pad), lambda i: (0, 0)),   # VMEM-resident
            pl.BlockSpec((1, C_pad), lambda i: (0, 0)),       # VMEM-resident
        ],
        out_specs=(pl.BlockSpec((tile_m, C_pad), lambda i: (i, 0)),
                   pl.BlockSpec((8, C_pad), lambda i: (i, 0))),
        compiler_params=cparams,
    )(patches_p, w_p, b_p)

    # ---- finalize BN stats (tiny, plain JAX) --------------------------------
    stats = stats.reshape(num_tiles, 8, C_pad)
    s = jnp.sum(stats[:, 0, :], axis=0)
    q = jnp.sum(stats[:, 1, :], axis=0)
    mean = s / M
    var = jnp.maximum(q / M - mean * mean, 0.0)    # biased var (BN training mode)
    scale = g_p * jax.lax.rsqrt(var + eps)
    shift = be_p - mean * scale
    ss = jnp.zeros((8, C_pad), jnp.float32).at[0].set(scale).at[1].set(shift)

    # ---- pass 2: apply per-channel affine normalization ---------------------
    out_mat = pl.pallas_call(
        _bn_apply_kernel,
        out_shape=jax.ShapeDtypeStruct((M_pad, C_pad), jnp.float32),
        grid=(num_tiles,),
        in_specs=[pl.BlockSpec((tile_m, C_pad), lambda i: (i, 0)),
                  pl.BlockSpec((8, C_pad), lambda i: (0, 0))],
        out_specs=pl.BlockSpec((tile_m, C_pad), lambda i: (i, 0)),
        compiler_params=cparams,
    )(y_full, ss)

    # slice off M / Cout padding, back to NCDHW
    out = out_mat[:M, :Cout].reshape(N, Do, Ho, Wo, Cout).transpose(0, 4, 1, 2, 3)
    return out


# ----------------------------- reference (pure JAX) ------------------------

def conv3_reference(x, weight, bias, gamma, beta, *, stride=1, padding=0,
                    dilation=1, negative_slope=0.2, eps=1e-5):
    stride, padding, dilation = _triple(stride), _triple(padding), _triple(dilation)
    y = jax.lax.conv_general_dilated(
        x, weight,
        window_strides=stride,
        padding=[(p, p) for p in padding],
        rhs_dilation=dilation,
        dimension_numbers=("NCDHW", "OIDHW", "NCDHW"),
    )
    y = y + bias.reshape(1, -1, 1, 1, 1)
    y = jnp.where(y >= 0, y, negative_slope * y)
    mean = jnp.mean(y, axis=(0, 2, 3, 4), keepdims=True)
    var = jnp.mean((y - mean) ** 2, axis=(0, 2, 3, 4), keepdims=True)
    y = (y - mean) * jax.lax.rsqrt(var + eps)
    y = y * gamma.reshape(1, -1, 1, 1, 1) + beta.reshape(1, -1, 1, 1, 1)
    return y


# ----------------------------- main -----------------------------------------

if __name__ == "__main__":
    key = jax.random.PRNGKey(0)
    kx, kwt, kb = jax.random.split(key, 3)

    # Small shapes: N=2, Cin=4, Cout=8, D=H=W=8, kernel=3, stride=1, padding=1
    N, Cin, Cout = 2, 4, 8
    D = H = W = 8
    ks = 3

    x = jax.random.normal(kx, (N, Cin, D, H, W), dtype=jnp.float32)
    weight = jax.random.normal(kwt, (Cout, Cin, ks, ks, ks), dtype=jnp.float32) * 0.1
    bias = jax.random.normal(kb, (Cout,), dtype=jnp.float32) * 0.1
    gamma = jnp.ones((Cout,), dtype=jnp.float32)   # BatchNorm3d default init
    beta = jnp.zeros((Cout,), dtype=jnp.float32)

    out = conv3_forward(x, weight, bias, gamma, beta,
                        stride=1, padding=1, dilation=1)
    out = jax.block_until_ready(out)

    ref = conv3_reference(x, weight, bias, gamma, beta,
                          stride=1, padding=1, dilation=1)
    ref = jax.block_until_ready(ref)

    assert out.shape == (N, Cout, D, H, W), out.shape
    # bf16 MXU operands (f32 accumulate) -> compare against the f32 reference
    # with a tolerance scaled to the unit-variance BN output.
    err = float(jnp.max(jnp.abs(out - ref)))
    assert err < 5e-2, err

    print("KERNEL_OK")
</pallas_src>

<mosaic_0001>
module attributes {stable_mosaic.version = 11 : i64} {
  func.func @_conv_act_stats_kernel(%arg0: i32, %arg1: memref<512x128xbf16, #tpu.memory_space<vmem>>, %arg2: memref<128x128xbf16, #tpu.memory_space<vmem>>, %arg3: memref<1x128xf32, #tpu.memory_space<vmem>>, %arg4: memref<512x128xf32, #tpu.memory_space<vmem>>, %arg5: memref<8x128xf32, #tpu.memory_space<vmem>>) attributes {dimension_semantics = [#tpu.dimension_semantics<parallel>], iteration_bounds = array<i64: 2>, scalar_prefetch = 0 : i64, scratch_operands = 0 : i64, tpu.core_type = #tpu.core_type<tc>, window_params = [{transform_indices = @transform_0, window_bounds = array<i64: 512, 128>}, {pipeline_mode = #tpu.pipeline_mode<synchronous>, transform_indices = @transform_1, window_bounds = array<i64: 128, 128>}, {pipeline_mode = #tpu.pipeline_mode<synchronous>, transform_indices = @transform_2, window_bounds = array<i64: 1, 128>}, {transform_indices = @transform_3, window_bounds = array<i64: 512, 128>}, {transform_indices = @transform_4, window_bounds = array<i64: 8, 128>}]} {
    %c0 = arith.constant 0 : index
    %c0_0 = arith.constant 0 : index
    %0 = vector.load %arg1[%c0, %c0_0] : memref<512x128xbf16, #tpu.memory_space<vmem>>, vector<512x128xbf16>
    %c0_1 = arith.constant 0 : index
    %c0_2 = arith.constant 0 : index
    %1 = vector.load %arg2[%c0_1, %c0_2] : memref<128x128xbf16, #tpu.memory_space<vmem>>, vector<128x128xbf16>
    %cst = arith.constant dense<0.000000e+00> : vector<512x128xf32>
    %2 = tpu.matmul %0, %1, %cst {dimension_numbers = #tpu.dot_dimension_numbers<[1], [0], [0], [1], [0, 0, 1, 1], [], []>} : vector<512x128xbf16>, vector<128x128xbf16>, vector<512x128xf32> -> vector<512x128xf32>
    %c0_3 = arith.constant 0 : index
    %c0_4 = arith.constant 0 : index
    %3 = vector.load %arg3[%c0_3, %c0_4] : memref<1x128xf32, #tpu.memory_space<vmem>>, vector<1x128xf32>
    %4 = vector.broadcast %3 : vector<1x128xf32> to vector<512x128xf32>
    %5 = arith.addf %2, %4 : vector<512x128xf32>
    %cst_5 = arith.constant 0.000000e+00 : f32
    %6 = vector.broadcast %cst_5 : f32 to vector<512x128xf32>
    %7 = arith.cmpf oge, %5, %6 : vector<512x128xf32>
    %cst_6 = arith.constant 2.000000e-01 : f32
    %8 = vector.broadcast %cst_6 : f32 to vector<512x128xf32>
    %9 = arith.mulf %8, %5 : vector<512x128xf32>
    %10 = arith.select %7, %5, %9 : vector<512x128xi1>, vector<512x128xf32>
    %c0_7 = arith.constant 0 : index
    %c0_8 = arith.constant 0 : index
    %11 = vector.load %arg4[%c0_7, %c0_8] : memref<512x128xf32, #tpu.memory_space<vmem>>, vector<512x128xf32>
    tpu.vector_store %arg4[%c0_7, %c0_8], %10 {strides = array<i32>} : memref<512x128xf32, #tpu.memory_space<vmem>>, vector<512x128xf32>,
    %12 = tpu.iota {dimensions = array<i32: 0>} : vector<512x1xi32>
    %c512_i32 = arith.constant 512 : i32
    %13 = arith.muli %arg0, %c512_i32 : i32
    %14 = vector.broadcast %13 : i32 to vector<512x1xi32>
    %15 = arith.addi %12, %14 : vector<512x1xi32>
    %c1024_i32 = arith.constant 1024 : i32
    %16 = vector.broadcast %c1024_i32 : i32 to vector<512x1xi32>
    %17 = arith.cmpi slt, %15, %16 : vector<512x1xi32>
    %cst_9 = arith.constant 0.000000e+00 : f32
    %18 = vector.shape_cast %17 : vector<512x1xi1> to vector<512x1xi1>
    %19 = vector.broadcast %18 : vector<512x1xi1> to vector<512x128xi1>
    %20 = vector.broadcast %cst_9 : f32 to vector<512x128xf32>
    %21 = arith.select %19, %10, %20 : vector<512x128xi1>, vector<512x128xf32>
    %cst_10 = arith.constant dense<0.000000e+00> : vector<128xf32>
    %22 = vector.multi_reduction <add>, %21, %cst_10 [0] : vector<512x128xf32> to vector<128xf32>
    %23 = vector.shape_cast %22 : vector<128xf32> to vector<1x128xf32>
    %24 = arith.mulf %21, %21 : vector<512x128xf32>
    %cst_11 = arith.constant dense<0.000000e+00> : vector<128xf32>
    %25 = vector.multi_reduction <add>, %24, %cst_11 [0] : vector<512x128xf32> to vector<128xf32>
    %26 = vector.shape_cast %25 : vector<128xf32> to vector<1x128xf32>
    %cst_12 = arith.constant 0.000000e+00 : f32
    %27 = vector.broadcast %cst_12 : f32 to vector<6x128xf32>
    %28 = tpu.concatenate %23, %26, %27 in 0 : vector<1x128xf32>, vector<1x128xf32>, vector<6x128xf32> -> vector<8x128xf32>
    %c0_13 = arith.constant 0 : index
    %c0_14 = arith.constant 0 : index
    %29 = vector.load %arg5[%c0_13, %c0_14] : memref<8x128xf32, #tpu.memory_space<vmem>>, vector<8x128xf32>
    tpu.vector_store %arg5[%c0_13, %c0_14], %28 {strides = array<i32>} : memref<8x128xf32, #tpu.memory_space<vmem>>, vector<8x128xf32>,
    return
  }
  func.func @transform_0(%arg0: i32) -> (i32, i32) {
    %c0_i32 = arith.constant 0 : i32
    %c0_i32_0 = arith.constant 0 : i32
    return %arg0, %c0_i32 : i32, i32
  }
  func.func @transform_1(%arg0: i32) -> (i32, i32) {
    %c0_i32 = arith.constant 0 : i32
    %c0_i32_0 = arith.constant 0 : i32
    %c0_i32_1 = arith.constant 0 : i32
    return %c0_i32, %c0_i32_0 : i32, i32
  }
  func.func @transform_2(%arg0: i32) -> (i32, i32) {
    %c0_i32 = arith.constant 0 : i32
    %c0_i32_0 = arith.constant 0 : i32
    %c0_i32_1 = arith.constant 0 : i32
    return %c0_i32, %c0_i32_0 : i32, i32
  }
  func.func @transform_3(%arg0: i32) -> (i32, i32) {
    %c0_i32 = arith.constant 0 : i32
    %c0_i32_0 = arith.constant 0 : i32
    return %arg0, %c0_i32 : i32, i32
  }
  func.func @transform_4(%arg0: i32) -> (i32, i32) {
    %c0_i32 = arith.constant 0 : i32
    %c0_i32_0 = arith.constant 0 : i32
    return %arg0, %c0_i32 : i32, i32
  }
}

module attributes {stable_mosaic.version = 11 : i64} {
  func.func @_bn_apply_kernel(%arg0: i32, %arg1: memref<512x128xf32, #tpu.memory_space<vmem>>, %arg2: memref<8x128xf32, #tpu.memory_space<vmem>>, %arg3: memref<512x128xf32, #tpu.memory_space<vmem>>) attributes {dimension_semantics = [#tpu.dimension_semantics<parallel>], iteration_bounds = array<i64: 2>, scalar_prefetch = 0 : i64, scratch_operands = 0 : i64, tpu.core_type = #tpu.core_type<tc>, window_params = [{transform_indices = @transform_0, window_bounds = array<i64: 512, 128>}, {pipeline_mode = #tpu.pipeline_mode<synchronous>, transform_indices = @transform_1, window_bounds = array<i64: 8, 128>}, {transform_indices = @transform_2, window_bounds = array<i64: 512, 128>}]} {
    %c0 = arith.constant 0 : index
    %c0_0 = arith.constant 0 : index
    %0 = vector.load %arg2[%c0, %c0_0] : memref<8x128xf32, #tpu.memory_space<vmem>>, vector<8x128xf32>
    %1 = vector.extract_strided_slice %0 {offsets = [0, 0], sizes = [1, 128], strides = [1, 1]} : vector<8x128xf32> to vector<1x128xf32>
    %2 = vector.extract_strided_slice %0 {offsets = [1, 0], sizes = [1, 128], strides = [1, 1]} : vector<8x128xf32> to vector<1x128xf32>
    %c0_1 = arith.constant 0 : index
    %c0_2 = arith.constant 0 : index
    %3 = vector.load %arg1[%c0_1, %c0_2] : memref<512x128xf32, #tpu.memory_space<vmem>>, vector<512x128xf32>
    %4 = vector.broadcast %1 : vector<1x128xf32> to vector<512x128xf32>
    %5 = arith.mulf %3, %4 : vector<512x128xf32>
    %6 = vector.broadcast %2 : vector<1x128xf32> to vector<512x128xf32>
    %7 = arith.addf %5, %6 : vector<512x128xf32>
    %c0_3 = arith.constant 0 : index
    %c0_4 = arith.constant 0 : index
    %8 = vector.load %arg3[%c0_3, %c0_4] : memref<512x128xf32, #tpu.memory_space<vmem>>, vector<512x128xf32>
    tpu.vector_store %arg3[%c0_3, %c0_4], %7 {strides = array<i32>} : memref<512x128xf32, #tpu.memory_space<vmem>>, vector<512x128xf32>,
    return
  }
  func.func @transform_0(%arg0: i32) -> (i32, i32) {
    %c0_i32 = arith.constant 0 : i32
    %c0_i32_0 = arith.constant 0 : i32
    return %arg0, %c0_i32 : i32, i32
  }
  func.func @transform_1(%arg0: i32) -> (i32, i32) {
    %c0_i32 = arith.constant 0 : i32
    %c0_i32_0 = arith.constant 0 : i32
    %c0_i32_1 = arith.constant 0 : i32
    return %c0_i32, %c0_i32_0 : i32, i32
  }
  func.func @transform_2(%arg0: i32) -> (i32, i32) {
    %c0_i32 = arith.constant 0 : i32
    %c0_i32_0 = arith.constant 0 : i32
    return %arg0, %c0_i32 : i32, i32
  }
}

</mosaic_0001>

<bundles_post_ra>
// kernel: conv3_forward.3
= control target key start
LH: loop header
LB: loop body
LE: loop exit
PB: predicated region body
PF: predicated region fallthrough
CT: control target
= control target key end

     0   :  { %s510_s9 = smov 0   ;;  %s794_s0 = inlined_call_operand.vmem [shape: f32[1024,128], index: 0, kind: input, shape index: {}]   ;;  %s795_s1 = inlined_call_operand.vmem [shape: f32[8,128], index: 1, kind: input, shape index: {}]   ;;  %s796_s2 = inlined_call_operand.vmem [shape: f32[1024,128], index: 2, kind: output, shape index: {}]  }
   0x1 LB: > { %s468_s10 = sadd.s32 4294967295, %s493_s9   ;;  %p472_p0 = scmp.ge.s32.totalorder %s493_s9, 1  ;;  %s493_s9 = sphi %s510_s9, %s12_s9  }
   0x2   : > { %p113_p1 = scmp.lt.s32.totalorder %s493_s9, 3 }
   0x4   : > { %p114_p2 = pnand %p472_p0, %p113_p1 }
   0x5   : > { %s473_s11 = sshll.u32 (!%p114_p2), %s468_s10, 6  ;;  %v212_v0 = vlaneseq (!%p114_p2)  ;;  %v147_v2 = vld [vmem:[%s795_s1] sm:$0xff] (!%p114_p2) }
   0x6   : > { %117 = sbr.rel (%p114_p2) target bundleno = 59 (0x3b), region = 28  ;;  %p136_p3 = scmp.lt.s32.totalorder (!%p114_p2), %s473_s11, 127 }
   0x7   : > { %v213_v1 = vshrl.u32 (!%p114_p2), %v212_v0, 7 }
   0x9   : > { %v214_v3 = vsub.s32 (!%p114_p2), 0, %v213_v1  ;;  %v282_v4 = vsub.s32 (!%p114_p2), 1, %v213_v1 }
   0xb   : > { %v526_v5 = vrot.slane (!%p114_p2), %v147_v2, %v214_v3  ;;  %v528_v6 = vrot.slane (!%p114_p2), %v147_v2, %v282_v4 }
   0xd   : > { %s798_s11 = smov (!%p136_p3, %s473_s11), 127 }
   0xe   : > { %s474_s14 = sshll.u32 %s798_s11, 3 }
   0xf   : > { %s524_s17 = scalar_lea.vmem %s794_s0, %s474_s14  ;;  %s542_s20 = scalar_lea.vmem %s796_s2, %s474_s14 }
  0x10   : > { %v148_v7 = vld [vmem:[%s524_s17] sm:$0xff]  ;;  %v149_v8 = vld [vmem:[%s524_s17 + $0x8] sm:$0xff]  ;;  %v150_v9 = vld [vmem:[%s524_s17 + $0x10] sm:$0xff] }
  0x11   : > { %v216_v10 = vmul.f32 %v526_v5, %v148_v7  ;;  %v217_v11 = vmul.f32 %v526_v5, %v149_v8  ;;  %v218_v12 = vmul.f32 %v526_v5, %v150_v9  ;;  %v151_v13 = vld [vmem:[%s524_s17 + $0x18] sm:$0xff]  ;;  %v152_v14 = vld [vmem:[%s524_s17 + $0x20] sm:$0xff]  ;;  %v153_v15 = vld [vmem:[%s524_s17 + $0x28] sm:$0xff] }
  0x12   : > { %v219_v16 = vmul.f32 %v526_v5, %v151_v13  ;;  %v220_v17 = vmul.f32 %v526_v5, %v152_v14  ;;  %v221_v18 = vmul.f32 %v526_v5, %v153_v15  ;;  %v154_v19 = vld [vmem:[%s524_s17 + $0x30] sm:$0xff]  ;;  %v155_v20 = vld [vmem:[%s524_s17 + $0x38] sm:$0xff]  ;;  %v156_v21 = vld [vmem:[%s524_s17 + $0x40] sm:$0xff] }
  0x13   : > { %v284_v22 = vadd.f32 %v528_v6, %v216_v10  ;;  %v285_v23 = vadd.f32 %v528_v6, %v217_v11  ;;  %v286_v24 = vadd.f32 %v528_v6, %v218_v12  ;;  %v222_v25 = vmul.f32 %v526_v5, %v154_v19  ;;  %v157_v26 = vld [vmem:[%s524_s17 + $0x48] sm:$0xff]  ;;  %v158_v27 = vld [vmem:[%s524_s17 + $0x50] sm:$0xff]  ;;  %v159_v28 = vld [vmem:[%s524_s17 + $0x58] sm:$0xff] }
  0x14   : > { %v287_v29 = vadd.f32 %v528_v6, %v219_v16  ;;  %v288_v30 = vadd.f32 %v528_v6, %v220_v17  ;;  %v289_v31 = vadd.f32 %v528_v6, %v221_v18  ;;  %v223_v32 = vmul.f32 %v526_v5, %v155_v20  ;;  %v160_v33 = vld [vmem:[%s524_s17 + $0x60] sm:$0xff]  ;;  %v161_v34 = vld [vmem:[%s524_s17 + $0x68] sm:$0xff]  ;;  %v162_v35 = vld [vmem:[%s524_s17 + $0x70] sm:$0xff] }
  0x15   : > { %348 = vst [vmem:[%s542_s20] sm:$0xff] %v284_v22  ;;  %349 = vst [vmem:[%s542_s20 + $0x8] sm:$0xff] %v285_v23  ;;  %v290_v36 = vadd.f32 %v528_v6, %v222_v25  ;;  %v224_v37 = vmul.f32 %v526_v5, %v156_v21  ;;  %v225_v38 = vmul.f32 %v526_v5, %v157_v26  ;;  %v163_v40 = vld [vmem:[%s524_s17 + $0x78] sm:$0xff]  ;;  %v164_v45 = vld [vmem:[%s524_s17 + $0x80] sm:$0xff] }
  0x16   : > { %350 = vst [vmem:[%s542_s20 + $0x10] sm:$0xff] %v286_v24  ;;  %v226_v39 = vmul.f32 %v526_v5, %v158_v27  ;;  %351 = vst [vmem:[%s542_s20 + $0x18] sm:$0xff] %v287_v29  ;;  %v291_v41 = vadd.f32 %v528_v6, %v223_v32  ;;  %v227_v42 = vmul.f32 %v526_v5, %v159_v28  ;;  %v165_v46 = vld [vmem:[%s524_s17 + $0x88] sm:$0xff]  ;;  %v166_v47 = vld [vmem:[%s524_s17 + $0x90] sm:$0xff] }
  0x17   : > { %352 = vst [vmem:[%s542_s20 + $0x20] sm:$0xff] %v288_v30  ;;  %353 = vst [vmem:[%s542_s20 + $0x28] sm:$0xff] %v289_v31  ;;  %v228_v43 = vmul.f32 %v526_v5, %v160_v33  ;;  %v229_v44 = vmul.f32 %v526_v5, %v161_v34  ;;  %v292_v48 = vadd.f32 %v528_v6, %v224_v37  ;;  %v167_v52 = vld [vmem:[%s524_s17 + $0x98] sm:$0xff]  ;;  %v168_v53 = vld [vmem:[%s524_s17 + $0xa0] sm:$0xff] }
  0x18   : > { %354 = vst [vmem:[%s542_s20 + $0x30] sm:$0xff] %v290_v36  ;;  %v293_v49 = vadd.f32 %v528_v6, %v225_v38  ;;  %v294_v50 = vadd.f32 %v528_v6, %v226_v39  ;;  %v230_v51 = vmul.f32 %v526_v5, %v162_v35  ;;  %v169_v54 = vld [vmem:[%s524_s17 + $0xa8] sm:$0xff]  ;;  %355 = vst [vmem:[%s542_s20 + $0x38] sm:$0xff] %v291_v41  ;;  %v170_v59 = vld [vmem:[%s524_s17 + $0xb0] sm:$0xff] }
  0x19   : > { %v295_v55 = vadd.f32 %v528_v6, %v227_v42  ;;  %v296_v56 = vadd.f32 %v528_v6, %v228_v43  ;;  %v297_v57 = vadd.f32 %v528_v6, %v229_v44  ;;  %v231_v58 = vmul.f32 %v526_v5, %v163_v40  ;;  %356 = vst [vmem:[%s542_s20 + $0x40] sm:$0xff] %v292_v48  ;;  %v171_v0 = vld [vmem:[%s524_s17 + $0xb8] sm:$0xff]  ;;  %v172_v7 = vld [vmem:[%s524_s17 + $0xc0] sm:$0xff]  ;;  %v173_v8 = vld [vmem:[%s524_s17 + $0xc8] sm:$0xff] }
  0x1a   : > { %357 = vst [vmem:[%s542_s20 + $0x48] sm:$0xff] %v293_v49  ;;  %358 = vst [vmem:[%s542_s20 + $0x50] sm:$0xff] %v294_v50  ;;  %v298_v60 = vadd.f32 %v528_v6, %v230_v51  ;;  %v232_v61 = vmul.f32 %v526_v5, %v164_v45  ;;  %v233_v62 = vmul.f32 %v526_v5, %v165_v46  ;;  %v174_v9 = vld [vmem:[%s524_s17 + $0xd0] sm:$0xff]  ;;  %v175_v14 = vld [vmem:[%s524_s17 + $0xd8] sm:$0xff] }
  0x1b   : > { %v234_v63 = vmul.f32 %v526_v5, %v166_v47  ;;  %359 = vst [vmem:[%s542_s20 + $0x58] sm:$0xff] %v295_v55  ;;  %360 = vst [vmem:[%s542_s20 + $0x60] sm:$0xff] %v296_v56  ;;  %v299_v1 = vadd.f32 %v528_v6, %v231_v58  ;;  %v235_v2 = vmul.f32 %v526_v5, %v167_v52  ;;  %v176_v15 = vld [vmem:[%s524_s17 + $0xe0] sm:$0xff]  ;;  %v177_v16 = vld [vmem:[%s524_s17 + $0xe8] sm:$0xff] }
  0x1c   : > { %361 = vst [vmem:[%s542_s20 + $0x68] sm:$0xff] %v297_v57  ;;  %v236_v3 = vmul.f32 %v526_v5, %v168_v53  ;;  %v237_v4 = vmul.f32 %v526_v5, %v169_v54  ;;  %362 = vst [vmem:[%s542_s20 + $0x70] sm:$0xff] %v298_v60  ;;  %v300_v10 = vadd.f32 %v528_v6, %v232_v61  ;;  %v178_v21 = vld [vmem:[%s524_s17 + $0xf0] sm:$0xff]  ;;  %v179_v26 = vld [vmem:[%s524_s17 + $0xf8] sm:$0xff] }
  0x1d   : > { %v301_v11 = vadd.f32 %v528_v6, %v233_v62  ;;  %v302_v12 = vadd.f32 %v528_v6, %v234_v63  ;;  %v238_v13 = vmul.f32 %v526_v5, %v170_v59  ;;  %363 = vst [vmem:[%s542_s20 + $0x78] sm:$0xff] %v299_v1  ;;  %v303_v17 = vadd.f32 %v528_v6, %v235_v2  ;;  %v180_v31 = vld [vmem:[%s524_s17 + $0x100] sm:$0xff]  ;;  %v181_v32 = vld [vmem:[%s524_s17 + $0x108] sm:$0xff]  ;;  %v182_v33 = vld [vmem:[%s524_s17 + $0x110] sm:$0xff] }
  0x1e   : > { %v304_v18 = vadd.f32 %v528_v6, %v236_v3  ;;  %v305_v19 = vadd.f32 %v528_v6, %v237_v4  ;;  %v239_v20 = vmul.f32 %v526_v5, %v171_v0  ;;  %364 = vst [vmem:[%s542_s20 + $0x80] sm:$0xff] %v300_v10  ;;  %v240_v23 = vmul.f32 %v526_v5, %v172_v7  ;;  %v183_v38 = vld [vmem:[%s524_s17 + $0x118] sm:$0xff]  ;;  %v184_v39 = vld [vmem:[%s524_s17 + $0x120] sm:$0xff]  ;;  %v185_v40 = vld [vmem:[%s524_s17 + $0x128] sm:$0xff] }
  0x1f   : > { %365 = vst [vmem:[%s542_s20 + $0x88] sm:$0xff] %v301_v11  ;;  %366 = vst [vmem:[%s542_s20 + $0x90] sm:$0xff] %v302_v12  ;;  %v306_v22 = vadd.f32 %v528_v6, %v238_v13  ;;  %v241_v24 = vmul.f32 %v526_v5, %v173_v8  ;;  %v242_v25 = vmul.f32 %v526_v5, %v174_v9  ;;  %v186_v45 = vld [vmem:[%s524_s17 + $0x130] sm:$0xff]  ;;  %v187_v50 = vld [vmem:[%s524_s17 + $0x138] sm:$0xff] }
  0x20   : > { %367 = vst [vmem:[%s542_s20 + $0x98] sm:$0xff] %v303_v17  ;;  %368 = vst [vmem:[%s542_s20 + $0xa0] sm:$0xff] %v304_v18  ;;  %v307_v27 = vadd.f32 %v528_v6, %v239_v20  ;;  %v243_v28 = vmul.f32 %v526_v5, %v175_v14  ;;  %v244_v29 = vmul.f32 %v526_v5, %v176_v15  ;;  %v188_v55 = vld [vmem:[%s524_s17 + $0x140] sm:$0xff]  ;;  %v189_v56 = vld [vmem:[%s524_s17 + $0x148] sm:$0xff] }
  0x21   : > { %369 = vst [vmem:[%s542_s20 + $0xa8] sm:$0xff] %v305_v19  ;;  %v245_v30 = vmul.f32 %v526_v5, %v177_v16  ;;  %370 = vst [vmem:[%s542_s20 + $0xb0] sm:$0xff] %v306_v22  ;;  %v308_v34 = vadd.f32 %v528_v6, %v240_v23  ;;  %v309_v35 = vadd.f32 %v528_v6, %v241_v24  ;;  %v190_v57 = vld [vmem:[%s524_s17 + $0x150] sm:$0xff]  ;;  %v191_v62 = vld [vmem:[%s524_s17 + $0x158] sm:$0xff] }
  0x22   : > { %v310_v36 = vadd.f32 %v528_v6, %v242_v25  ;;  %v246_v37 = vmul.f32 %v526_v5, %v178_v21  ;;  %371 = vst [vmem:[%s542_s20 + $0xb8] sm:$0xff] %v307_v27  ;;  %v311_v41 = vadd.f32 %v528_v6, %v243_v28  ;;  %v312_v42 = vadd.f32 %v528_v6, %v244_v29  ;;  %v192_v63 = vld [vmem:[%s524_s17 + $0x160] sm:$0xff]  ;;  %v193_v0 = vld [vmem:[%s524_s17 + $0x168] sm:$0xff]  ;;  %v194_v7 = vld [vmem:[%s524_s17 + $0x170] sm:$0xff] }
  0x23   : > { %v313_v43 = vadd.f32 %v528_v6, %v245_v30  ;;  %v247_v44 = vmul.f32 %v526_v5, %v179_v26  ;;  %372 = vst [vmem:[%s542_s20 + $0xc0] sm:$0xff] %v308_v34  ;;  %373 = vst [vmem:[%s542_s20 + $0xc8] sm:$0xff] %v309_v35  ;;  %v248_v47 = vmul.f32 %v526_v5, %v180_v31  ;;  %v195_v12 = vld [vmem:[%s524_s17 + $0x178] sm:$0xff]  ;;  %v196_v17 = vld [vmem:[%s524_s17 + $0x180] sm:$0xff] }
  0x24   : > { %374 = vst [vmem:[%s542_s20 + $0xd0] sm:$0xff] %v310_v36  ;;  %v314_v46 = vadd.f32 %v528_v6, %v246_v37  ;;  %v249_v48 = vmul.f32 %v526_v5, %v181_v32  ;;  %v250_v49 = vmul.f32 %v526_v5, %v182_v33  ;;  %375 = vst [vmem:[%s542_s20 + $0xd8] sm:$0xff] %v311_v41  ;;  %v197_v18 = vld [vmem:[%s524_s17 + $0x188] sm:$0xff]  ;;  %v198_v19 = vld [vmem:[%s524_s17 + $0x190] sm:$0xff] }
  0x25   : > { %376 = vst [vmem:[%s542_s20 + $0xe0] sm:$0xff] %v312_v42  ;;  %377 = vst [vmem:[%s542_s20 + $0xe8] sm:$0xff] %v313_v43  ;;  %v315_v51 = vadd.f32 %v528_v6, %v247_v44  ;;  %v251_v52 = vmul.f32 %v526_v5, %v183_v38  ;;  %v252_v53 = vmul.f32 %v526_v5, %v184_v39  ;;  %v199_v24 = vld [vmem:[%s524_s17 + $0x198] sm:$0xff]  ;;  %v200_v25 = vld [vmem:[%s524_s17 + $0x1a0] sm:$0xff] }
  0x26   : > { %v253_v54 = vmul.f32 %v526_v5, %v185_v40  ;;  %378 = vst [vmem:[%s542_s20 + $0xf0] sm:$0xff] %v314_v46  ;;  %v316_v58 = vadd.f32 %v528_v6, %v248_v47  ;;  %v317_v59 = vadd.f32 %v528_v6, %v249_v48  ;;  %v318_v60 = vadd.f32 %v528_v6, %v250_v49  ;;  %v201_v26 = vld [vmem:[%s524_s17 + $0x1a8] sm:$0xff]  ;;  %v202_v31 = vld [vmem:[%s524_s17 + $0x1b0] sm:$0xff]  ;;  %v203_v36 = vld [vmem:[%s524_s17 + $0x1b8] sm:$0xff] }
  0x27   : > { %v254_v61 = vmul.f32 %v526_v5, %v186_v45  ;;  %379 = vst [vmem:[%s542_s20 + $0xf8] sm:$0xff] %v315_v51  ;;  %v319_v1 = vadd.f32 %v528_v6, %v251_v52  ;;  %v320_v2 = vadd.f32 %v528_v6, %v252_v53  ;;  %v255_v4 = vmul.f32 %v526_v5, %v187_v50  ;;  %v204_v41 = vld [vmem:[%s524_s17 + $0x1c0] sm:$0xff]  ;;  %v205_v42 = vld [vmem:[%s524_s17 + $0x1c8] sm:$0xff]  ;;  %v206_v43 = vld [vmem:[%s524_s17 + $0x1d0] sm:$0xff] }
  0x28   : > { %v321_v3 = vadd.f32 %v528_v6, %v253_v54  ;;  %380 = vst [vmem:[%s542_s20 + $0x100] sm:$0xff] %v316_v58  ;;  %381 = vst [vmem:[%s542_s20 + $0x108] sm:$0xff] %v317_v59  ;;  %v256_v9 = vmul.f32 %v526_v5, %v188_v55  ;;  %v257_v10 = vmul.f32 %v526_v5, %v189_v56  ;;  %v207_v48 = vld [vmem:[%s524_s17 + $0x1d8] sm:$0xff]  ;;  %v208_v49 = vld [vmem:[%s524_s17 + $0x1e0] sm:$0xff] }
  0x29   : > { %382 = vst [vmem:[%s542_s20 + $0x110] sm:$0xff] %v318_v60  ;;  %v322_v8 = vadd.f32 %v528_v6, %v254_v61  ;;  %v258_v11 = vmul.f32 %v526_v5, %v190_v57  ;;  %383 = vst [vmem:[%s542_s20 + $0x118] sm:$0xff] %v319_v1  ;;  %v323_v13 = vadd.f32 %v528_v6, %v255_v4  ;;  %v209_v50 = vld [vmem:[%s524_s17 + $0x1e8] sm:$0xff]  ;;  %v210_v55 = vld [vmem:[%s524_s17 + $0x1f0] sm:$0xff] }
  0x2a   : > { %384 = vst [vmem:[%s542_s20 + $0x120] sm:$0xff] %v320_v2  ;;  %385 = vst [vmem:[%s542_s20 + $0x128] sm:$0xff] %v321_v3  ;;  %v259_v14 = vmul.f32 %v526_v5, %v191_v62  ;;  %v260_v15 = vmul.f32 %v526_v5, %v192_v63  ;;  %v261_v16 = vmul.f32 %v526_v5, %v193_v0  ;;  %v211_v60 = vld [vmem:[%s524_s17 + $0x1f8] sm:$0xff] }
  0x2b   : > { %386 = vst [vmem:[%s542_s20 + $0x130] sm:$0xff] %v322_v8  ;;  %v324_v20 = vadd.f32 %v528_v6, %v256_v9  ;;  %v325_v21 = vadd.f32 %v528_v6, %v257_v10  ;;  %v326_v22 = vadd.f32 %v528_v6, %v258_v11  ;;  %v262_v23 = vmul.f32 %v526_v5, %v194_v7 }
  0x2c   : > { %387 = vst [vmem:[%s542_s20 + $0x138] sm:$0xff] %v323_v13  ;;  %v327_v27 = vadd.f32 %v528_v6, %v259_v14  ;;  %v328_v28 = vadd.f32 %v528_v6, %v260_v15  ;;  %v329_v29 = vadd.f32 %v528_v6, %v261_v16  ;;  %v263_v30 = vmul.f32 %v526_v5, %v195_v12 }
  0x2d   : > { %388 = vst [vmem:[%s542_s20 + $0x140] sm:$0xff] %v324_v20  ;;  %389 = vst [vmem:[%s542_s20 + $0x148] sm:$0xff] %v325_v21  ;;  %v330_v32 = vadd.f32 %v528_v6, %v262_v23  ;;  %v264_v33 = vmul.f32 %v526_v5, %v196_v17  ;;  %v265_v34 = vmul.f32 %v526_v5, %v197_v18 }
  0x2e   : > { %390 = vst [vmem:[%s542_s20 + $0x150] sm:$0xff] %v326_v22  ;;  %v266_v35 = vmul.f32 %v526_v5, %v198_v19  ;;  %391 = vst [vmem:[%s542_s20 + $0x158] sm:$0xff] %v327_v27  ;;  %v331_v37 = vadd.f32 %v528_v6, %v263_v30  ;;  %v267_v38 = vmul.f32 %v526_v5, %v199_v24 }
  0x2f   : > { %392 = vst [vmem:[%s542_s20 + $0x160] sm:$0xff] %v328_v28  ;;  %393 = vst [vmem:[%s542_s20 + $0x168] sm:$0xff] %v329_v29  ;;  %v268_v39 = vmul.f32 %v526_v5, %v200_v25  ;;  %v269_v40 = vmul.f32 %v526_v5, %v201_v26  ;;  %v332_v44 = vadd.f32 %v528_v6, %v264_v33 }
  0x30   : > { %394 = vst [vmem:[%s542_s20 + $0x170] sm:$0xff] %v330_v32  ;;  %v333_v45 = vadd.f32 %v528_v6, %v265_v34  ;;  %v334_v46 = vadd.f32 %v528_v6, %v266_v35  ;;  %v270_v47 = vmul.f32 %v526_v5, %v202_v31  ;;  %395 = vst [vmem:[%s542_s20 + $0x178] sm:$0xff] %v331_v37 }
  0x31   : > { %v335_v51 = vadd.f32 %v528_v6, %v267_v38  ;;  %v336_v52 = vadd.f32 %v528_v6, %v268_v39  ;;  %v337_v53 = vadd.f32 %v528_v6, %v269_v40  ;;  %v271_v54 = vmul.f32 %v526_v5, %v203_v36  ;;  %396 = vst [vmem:[%s542_s20 + $0x180] sm:$0xff] %v332_v44 }
  0x32   : > { %397 = vst [vmem:[%s542_s20 + $0x188] sm:$0xff] %v333_v45  ;;  %398 = vst [vmem:[%s542_s20 + $0x190] sm:$0xff] %v334_v46  ;;  %v338_v56 = vadd.f32 %v528_v6, %v270_v47  ;;  %v272_v57 = vmul.f32 %v526_v5, %v204_v41  ;;  %v273_v58 = vmul.f32 %v526_v5, %v205_v42 }
  0x33   : > { %v274_v59 = vmul.f32 %v526_v5, %v206_v43  ;;  %399 = vst [vmem:[%s542_s20 + $0x198] sm:$0xff] %v335_v51  ;;  %400 = vst [vmem:[%s542_s20 + $0x1a0] sm:$0xff] %v336_v52  ;;  %v339_v61 = vadd.f32 %v528_v6, %v271_v54  ;;  %v275_v62 = vmul.f32 %v526_v5, %v207_v48 }
  0x34   : > { %401 = vst [vmem:[%s542_s20 + $0x1a8] sm:$0xff] %v337_v53  ;;  %v276_v63 = vmul.f32 %v526_v5, %v208_v49  ;;  %v277_v0 = vmul.f32 %v526_v5, %v209_v50  ;;  %402 = vst [vmem:[%s542_s20 + $0x1b0] sm:$0xff] %v338_v56  ;;  %v340_v1 = vadd.f32 %v528_v6, %v272_v57 }
  0x35   : > { %v341_v2 = vadd.f32 %v528_v6, %v273_v58  ;;  %v342_v3 = vadd.f32 %v528_v6, %v274_v59  ;;  %v278_v4 = vmul.f32 %v526_v5, %v210_v55  ;;  %403 = vst [vmem:[%s542_s20 + $0x1b8] sm:$0xff] %v339_v61  ;;  %v343_v7 = vadd.f32 %v528_v6, %v275_v62 }
  0x36   : > { %v344_v8 = vadd.f32 %v528_v6, %v276_v63  ;;  %v345_v9 = vadd.f32 %v528_v6, %v277_v0  ;;  %v279_v10 = vmul.f32 %v526_v5, %v211_v60  ;;  %404 = vst [vmem:[%s542_s20 + $0x1c0] sm:$0xff] %v340_v1 }
  0x37   : > { %405 = vst [vmem:[%s542_s20 + $0x1c8] sm:$0xff] %v341_v2  ;;  %406 = vst [vmem:[%s542_s20 + $0x1d0] sm:$0xff] %v342_v3  ;;  %v346_v11 = vadd.f32 %v528_v6, %v278_v4 }
  0x38   : > { %407 = vst [vmem:[%s542_s20 + $0x1d8] sm:$0xff] %v343_v7  ;;  %408 = vst [vmem:[%s542_s20 + $0x1e0] sm:$0xff] %v344_v8  ;;  %v347_v12 = vadd.f32 %v528_v6, %v279_v10 }
  0x39   : > { %409 = vst [vmem:[%s542_s20 + $0x1e8] sm:$0xff] %v345_v9  ;;  %410 = vst [vmem:[%s542_s20 + $0x1f0] sm:$0xff] %v346_v11 }
  0x3a   : > { %411 = vst [vmem:[%s542_s20 + $0x1f8] sm:$0xff] %v347_v12 }
  0x3b PF: > { %s12_s9 = sadd.s32 1, %s493_s9  }
  0x3c   : > { %p9_p4 = scmp.ge.s32.totalorder %s12_s9, 4  }
  0x3e   :  { %11 = sbr.rel (!%p9_p4) target bundleno = 1 (0x1), region = 58 }

// kernel: conv3_forward.2
= control target key start
LH: loop header
LB: loop body
LE: loop exit
PB: predicated region body
PF: predicated region fallthrough
CT: control target
= control target key end

     0   :  { %s2038_s15 = smov 0   ;;  %s2852_s0 = inlined_call_operand.vmem [shape: bf16[1024,128], index: 0, kind: input, shape index: {}]   ;;  %s2853_s1 = inlined_call_operand.vmem [shape: bf16[128,128], index: 1, kind: input, shape index: {}]   ;;  %s2854_s2 = inlined_call_operand.vmem [shape: f32[1,128], index: 2, kind: input, shape index: {}]   ;;  %s2855_s3 = inlined_call_operand.vmem [shape: f32[1024,128], index: 3, kind: output, shape index: {0}]   ;;  %s2856_s4 = inlined_call_operand.vmem [shape: f32[16,128], index: 4, kind: output, shape index: {1}]  }
   0x1 LB: > { %s2044_s16 = sadd.s32 4294967295, %s2011_s15   ;;  %p1770_p0 = scmp.ge.s32.totalorder %s2011_s15, 1  ;;  %s2011_s15 = sphi %s2038_s15, %s15_s15  }
   0x2   : > { %p166_p1 = scmp.lt.s32.totalorder %s2011_s15, 3 }
   0x4   : > { %p167_p2 = pnand %p1770_p0, %p166_p1 }
   0x6   : > { %170 = sbr.rel (%p167_p2) target bundleno = 428 (0x1ac), region = 32 }
   0xd   : > { %v1964_v0 = vld [vmem:[%s2853_s1] sm:$0xff]   ;;  %s1771_s19 = sshll.u32 %s2044_s16, 6  ;;  %v1965_v1 = vld [vmem:[%s2853_s1 + $0x8] sm:$0xff]   ;;  %v1966_v2 = vld [vmem:[%s2853_s1 + $0x10] sm:$0xff]   ;;  %v1085_v40 = vlaneseq  ;;  %s1817_s12 = sshll.u32 %s2044_s16, 9 }
   0xe   : > { %p197_p3 = scmp.lt.s32.totalorder %s1771_s19, 127  ;;  %1860 = vmatprep.subr.bf16.mxu0 %v1964_v0  ;;  %1940 = vmatprep.subr.bf16.mxu1 %v1964_v0  ;;  %v1967_v3 = vld [vmem:[%s2853_s1 + $0x18] sm:$0xff]   ;;  %v1968_v5 = vld [vmem:[%s2853_s1 + $0x20] sm:$0xff]   ;;  %v1969_v6 = vld [vmem:[%s2853_s1 + $0x28] sm:$0xff]   ;;  %v2117_v43 = vstv %s1817_s12  ;;  %p208_p4 = scmp.lt.s32.totalorder %s2044_s16, 1 }
   0xf   : > { %1861 = vmatpush3.bf16.msra.mxu0 %v1964_v0  ;;  %1948 = vmatpush3.bf16.msra.mxu1 %v1964_v0  ;;  %v1970_v7 = vld [vmem:[%s2853_s1 + $0x30] sm:$0xff]   ;;  %v1971_v8 = vld [vmem:[%s2853_s1 + $0x38] sm:$0xff]   ;;  %v2113_v41 = vshrl.u32 %v1085_v40, 7  ;;  %2881 = vst [vmem:[#allocation2_spill] sm:$0xff] %v2117_v43 }
  0x10   : > { %s2942_s19 = smov (!%p197_p3, %s1771_s19), 127  ;;  %1862 = vmatprep.subr.bf16.mxu0 %v1965_v1  ;;  %1941 = vmatprep.subr.bf16.mxu1 %v1965_v1  ;;  %s2944_s16 = smov (!%p208_p4, %s2044_s16), 1 }
  0x11   : > { %s1772_s24 = sshll.u32 %s2942_s19, 2  ;;  %v1088_v42 = vadd.s32 16, %v2113_v41  ;;  %v1089_v44 = vadd.s32 24, %v2113_v41  ;;  %v1087_v45 = vadd.s32 8, %v2113_v41  ;;  %v1092_v46 = vadd.s32 48, %v2113_v41  ;;  %s1774_s17 = sshll.u32 %s2942_s19, 3 }
  0x12   : > { %s2064_s27 = scalar_lea.vmem %s2852_s0, %s1772_s24  ;;  %v1090_v47 = vadd.s32 32, %v2113_v41  ;;  %v1093_v48 = vadd.s32 56, %v2113_v41  ;;  %v1091_v49 = vadd.s32 40, %v2113_v41  ;;  %v2130_v51 = vadd.s32 %v2117_v43, %v2113_v41  ;;  %s2364_s20 = scalar_lea.vmem %s2855_s3, %s1774_s17 }
  0x13   : > { %1863 = vmatpush3.bf16.msra.mxu0 %v1965_v1  ;;  %1949 = vmatpush3.bf16.msra.mxu1 %v1965_v1  ;;  %v1972_v4 = vld [vmem:[%s2064_s27] sm:$0xff]   ;;  %v1973_v10 = vld [vmem:[%s2064_s27 + $0x8] sm:$0xff]   ;;  %v1974_v11 = vld [vmem:[%s2064_s27 + $0x10] sm:$0xff]   ;;  %v2126_v50 = vadd.s32 %v2117_v43, %v1088_v42  ;;  %v2133_v52 = vadd.s32 %v2117_v43, %v1089_v44  ;;  %v2136_v53 = vadd.s32 %v2117_v43, %v1087_v45  ;;  %v1096_v57 = vadd.s32 80, %v2113_v41  ;;  %s1775_s23 = sshll.u32 %s2944_s16, 3 }
  0x14   : > { %1864 = vmatprep.subr.bf16.mxu0 %v1966_v2  ;;  %1942 = vmatprep.subr.bf16.mxu1 %v1966_v2  ;;  %v1988_v9 = vld [vmem:[%s2064_s27 + $0x80] sm:$0xff]   ;;  %v1989_v12 = vld [vmem:[%s2064_s27 + $0x88] sm:$0xff]   ;;  %v1990_v13 = vld [vmem:[%s2064_s27 + $0x90] sm:$0xff]   ;;  %v2139_v54 = vadd.s32 %v2117_v43, %v1092_v46  ;;  %v2142_v55 = vadd.s32 %v2117_v43, %v1090_v47  ;;  %v2145_v56 = vadd.s32 %v2117_v43, %v1093_v48  ;;  %v1094_v58 = vadd.s32 64, %v2113_v41  ;;  %s211_s26 = scalar_lea.vmem %s2856_s4, %s1775_s23 }
  0x15   : > { %1876 = vmatprep.mubr.bf16.mxu0 %v1972_v4  ;;  %1908 = vmatprep.mubr.bf16.mxu1 %v1988_v9  ;;  %v1975_v14 = vld [vmem:[%s2064_s27 + $0x18] sm:$0xff]   ;;  %v1976_v15 = vld [vmem:[%s2064_s27 + $0x20] sm:$0xff]   ;;  %v1977_v18 = vld [vmem:[%s2064_s27 + $0x28] sm:$0xff]   ;;  %v2150_v59 = vadd.s32 %v2117_v43, %v1091_v49  ;;  %v1097_v60 = vadd.s32 88, %v2113_v41  ;;  %v1095_v61 = vadd.s32 72, %v2113_v41  ;;  %v1100_v62 = vadd.s32 112, %v2113_v41 }
  0x16   : > { %v1991_v16 = vld [vmem:[%s2064_s27 + $0x98] sm:$0xff]   ;;  %v1992_v17 = vld [vmem:[%s2064_s27 + $0xa0] sm:$0xff]   ;;  %v1993_v19 = vld [vmem:[%s2064_s27 + $0xa8] sm:$0xff]   ;;  %v1098_v63 = vadd.s32 96, %v2113_v41  ;;  %v1101_v0 = vadd.s32 120, %v2113_v41  ;;  %v1099_v1 = vadd.s32 104, %v2113_v41 }
  0x17   : > { %1865 = vmatpush3.bf16.msra.mxu0 %v1966_v2  ;;  %1950 = vmatpush3.bf16.msra.mxu1 %v1966_v2  ;;  %v1978_v20 = vld [vmem:[%s2064_s27 + $0x30] sm:$0xff]   ;;  %v1979_v22 = vld [vmem:[%s2064_s27 + $0x38] sm:$0xff]   ;;  %v1980_v24 = vld [vmem:[%s2064_s27 + $0x40] sm:$0xff]   ;;  %v1104_v2 = vadd.s32 144, %v2113_v41  ;;  %v1105_v4 = vadd.s32 152, %v2113_v41  ;;  %v1106_v9 = vadd.s32 160, %v2113_v41 }
  0x18   : > { %1866 = vmatprep.subr.bf16.mxu0 %v1967_v3  ;;  %1943 = vmatprep.subr.bf16.mxu1 %v1967_v3  ;;  %v1994_v21 = vld [vmem:[%s2064_s27 + $0xb0] sm:$0xff]   ;;  %v1995_v23 = vld [vmem:[%s2064_s27 + $0xb8] sm:$0xff]   ;;  %v1996_v25 = vld [vmem:[%s2064_s27 + $0xc0] sm:$0xff]   ;;  %v1122_v42 = vadd.s32 288, %v2113_v41  ;;  %v1125_v44 = vadd.s32 312, %v2113_v41  ;;  %v1123_v48 = vadd.s32 296, %v2113_v41 }
  0x19   : > { %v1981_v26 = vld [vmem:[%s2064_s27 + $0x48] sm:$0xff]   ;;  %v1982_v28 = vld [vmem:[%s2064_s27 + $0x50] sm:$0xff]   ;;  %v1983_v30 = vld [vmem:[%s2064_s27 + $0x58] sm:$0xff]   ;;  %vm1218_vm0 = vcmp.lt.s32.totalorder %v2126_v50, 1024  ;;  %vm1216_vm1 = vcmp.lt.s32.totalorder %v2130_v51, 1024  ;;  %vm1217_vm2 = vcmp.lt.s32.totalorder %v2136_v53, 1024 }
  0x1a   : > { %v1997_v27 = vld [vmem:[%s2064_s27 + $0xc8] sm:$0xff]   ;;  %v1998_v29 = vld [vmem:[%s2064_s27 + $0xd0] sm:$0xff]   ;;  %v1999_v31 = vld [vmem:[%s2064_s27 + $0xd8] sm:$0xff]   ;;  %vm1219_vm3 = vcmp.lt.s32.totalorder %v2133_v52, 1024  ;;  %vm1220_vm7 = vcmp.lt.s32.totalorder %v2142_v55, 1024  ;;  %vm1222_vm10 = vcmp.lt.s32.totalorder %v2139_v54, 1024 }
  0x1b   : > { %1867 = vmatpush3.bf16.msra.mxu0 %v1967_v3  ;;  %1951 = vmatpush3.bf16.msra.mxu1 %v1967_v3  ;;  %v1984_v32 = vld [vmem:[%s2064_s27 + $0x60] sm:$0xff]   ;;  %v1985_v34 = vld [vmem:[%s2064_s27 + $0x68] sm:$0xff]   ;;  %v1986_v36 = vld [vmem:[%s2064_s27 + $0x70] sm:$0xff]   ;;  %v1102_v3 = vadd.s32 128, %v2113_v41  ;;  %vm1223_vm11 = vcmp.lt.s32.totalorder %v2145_v56, 1024  ;;  %vm1221_vm13 = vcmp.lt.s32.totalorder %v2150_v59, 1024 }
  0x1c   : > { %1868 = vmatprep.subr.bf16.mxu0 %v1968_v5  ;;  %1944 = vmatprep.subr.bf16.mxu1 %v1968_v5  ;;  %v2000_v33 = vld [vmem:[%s2064_s27 + $0xe0] sm:$0xff]   ;;  %v2001_v35 = vld [vmem:[%s2064_s27 + $0xe8] sm:$0xff]   ;;  %v2002_v37 = vld [vmem:[%s2064_s27 + $0xf0] sm:$0xff]  }
  0x1d   : > { %v1987_v38 = vld [vmem:[%s2064_s27 + $0x78] sm:$0xff]  }
  0x1e   : > { %v2003_v39 = vld [vmem:[%s2064_s27 + $0xf8] sm:$0xff]  }
  0x1f   : > { %1869 = vmatpush3.bf16.msra.mxu0 %v1968_v5  ;;  %1952 = vmatpush3.bf16.msra.mxu1 %v1968_v5  ;;  %v1103_v5 = vadd.s32 136, %v2113_v41 }
  0x20   : > { %1870 = vmatprep.subr.bf16.mxu0 %v1969_v6  ;;  %1945 = vmatprep.subr.bf16.mxu1 %v1969_v6 }
  0x23   : > { %1871 = vmatpush3.bf16.msra.mxu0 %v1969_v6  ;;  %1953 = vmatpush3.bf16.msra.mxu1 %v1969_v6  ;;  %v1108_v6 = vadd.s32 176, %v2113_v41 }
  0x24   : > { %1872 = vmatprep.subr.bf16.mxu0 %v1970_v7  ;;  %1946 = vmatprep.subr.bf16.mxu1 %v1970_v7 }
  0x27   : > { %1873 = vmatpush3.bf16.msra.mxu0 %v1970_v7  ;;  %1954 = vmatpush3.bf16.msra.mxu1 %v1970_v7  ;;  %v2164_v7 = vadd.s32 %v2117_v43, %v1096_v57 }
  0x28   : > { %1874 = vmatprep.subr.bf16.mxu0 %v1971_v8  ;;  %1947 = vmatprep.subr.bf16.mxu1 %v1971_v8 }
  0x2b   : > { %1875 = vmatpush3.bf16.msra.mxu0 %v1971_v8  ;;  %1955 = vmatpush3.bf16.msra.mxu1 %v1971_v8  ;;  %v2167_v8 = vadd.s32 %v2117_v43, %v1094_v58 }
  0x2e   : > { %1877 = vmatmul.mubr.bf16.vlgmr.msra.gmra.mrb[0].mxu0 %v1973_v10  ;;  %1909 = vmatmul.mubr.bf16.vlgmr.msra.gmra.mrb[0].mxu1 %v1989_v12  ;;  %v1109_v10 = vadd.s32 184, %v2113_v41  ;;  %v2175_v12 = vadd.s32 %v2117_v43, %v1095_v61 }
  0x2f   : > { %1880 = vmatprep.mubr.bf16.mxu0 %v1974_v11  ;;  %1912 = vmatprep.mubr.bf16.mxu1 %v1990_v13  ;;  %v2172_v11 = vadd.s32 %v2117_v43, %v1097_v60  ;;  %v2178_v13 = vadd.s32 %v2117_v43, %v1100_v62 }
  0x36   : > { %1881 = vmatmul.mubr.bf16.gmra.mrb[4].mxu0 %v1975_v14  ;;  %1913 = vmatmul.mubr.bf16.gmra.mrb[4].mxu1 %v1991_v16  ;;  %v1107_v14 = vadd.s32 168, %v2113_v41  ;;  %v2185_v16 = vadd.s32 %v2117_v43, %v1101_v0 }
  0x37   : > { %1884 = vmatprep.mubr.bf16.mxu0 %v1976_v15  ;;  %1916 = vmatprep.mubr.bf16.mxu1 %v1992_v17  ;;  %v2182_v15 = vadd.s32 %v2117_v43, %v1098_v63  ;;  %v2188_v17 = vadd.s32 %v2117_v43, %v1099_v1  ;;  %v2270_v1 = vadd.s32 %v2117_v43, %v1122_v42 }
  0x39   : > { %2883 = vst [vmem:[#allocation4_spill] sm:$0xff] %v2270_v1 }
  0x3e   : > { %1885 = vmatmul.mubr.bf16.gmra.mrb[8].mxu0 %v1977_v18  ;;  %1917 = vmatmul.mubr.bf16.gmra.mrb[8].mxu1 %v1993_v19  ;;  %v2191_v18 = vadd.s32 %v2117_v43, %v1104_v2  ;;  %v2194_v19 = vadd.s32 %v2117_v43, %v1102_v3  ;;  %v2273_v2 = vadd.s32 %v2117_v43, %v1125_v44  ;;  %v1128_v3 = vadd.s32 336, %v2113_v41 }
  0x3f   : > { %1888 = vmatprep.mubr.bf16.mxu0 %v1978_v20  ;;  %1920 = vmatprep.mubr.bf16.mxu1 %v1994_v21  ;;  %v2197_v20 = vadd.s32 %v2117_v43, %v1105_v4  ;;  %v2200_v21 = vadd.s32 %v2117_v43, %v1103_v5  ;;  %v1126_v4 = vadd.s32 320, %v2113_v41  ;;  %v2278_v5 = vadd.s32 %v2117_v43, %v1123_v48 }
  0x40   : > { %2884 = vst [vmem:[#allocation5_spill] sm:$0xff] %v2273_v2  ;;  %v1139_v48 = vadd.s32 424, %v2113_v41 }
  0x41   : > { %2885 = vst [vmem:[#allocation6_spill] sm:$0xff] %v2278_v5 }
  0x46   : > { %1889 = vmatmul.mubr.bf16.gmra.mrb[12].mxu0 %v1979_v22  ;;  %1921 = vmatmul.mubr.bf16.gmra.mrb[12].mxu1 %v1995_v23  ;;  %v2203_v22 = vadd.s32 %v2117_v43, %v1108_v6  ;;  %v2206_v23 = vadd.s32 %v2117_v43, %v1106_v9  ;;  %v1129_v6 = vadd.s32 344, %v2113_v41  ;;  %v1127_v9 = vadd.s32 328, %v2113_v41 }
  0x47   : > { %1892 = vmatprep.mubr.bf16.mxu0 %v1980_v24  ;;  %1924 = vmatprep.mubr.bf16.mxu1 %v1996_v25  ;;  %v2209_v24 = vadd.s32 %v2117_v43, %v1109_v10  ;;  %v1112_v25 = vadd.s32 208, %v2113_v41  ;;  %v1132_v10 = vadd.s32 368, %v2113_v41 }
  0x48   : > { %v2311_v42 = vadd.s32 %v2117_v43, %v1127_v9 }
  0x49   : > { %v2314_v44 = vadd.s32 %v2117_v43, %v1132_v10 }
  0x4a   : > { %2889 = vst [vmem:[#allocation10_spill] sm:$0xff] %v2311_v42 }
  0x4b   : > { %2890 = vst [vmem:[#allocation11_spill] sm:$0xff] %v2314_v44 }
  0x4e   : > { %1893 = vmatmul.mubr.bf16.gmra.mrb[16].mxu0 %v1981_v26  ;;  %1925 = vmatmul.mubr.bf16.gmra.mrb[16].mxu1 %v1997_v27  ;;  %v1110_v26 = vadd.s32 192, %v2113_v41  ;;  %v2214_v27 = vadd.s32 %v2117_v43, %v1107_v14  ;;  %v1130_v14 = vadd.s32 352, %v2113_v41 }
  0x4f   : > { %1896 = vmatprep.mubr.bf16.mxu0 %v1982_v28  ;;  %1928 = vmatprep.mubr.bf16.mxu1 %v1998_v29  ;;  %v1113_v28 = vadd.s32 216, %v2113_v41  ;;  %v1111_v29 = vadd.s32 200, %v2113_v41 }
  0x50   : > { %v2231_v40 = vadd.s32 %v2117_v43, %v1110_v26  ;;  %v1131_v26 = vadd.s32 360, %v2113_v41 }
  0x51   : > { %v2236_v45 = vadd.s32 %v2117_v43, %v1113_v28  ;;  %v2239_v46 = vadd.s32 %v2117_v43, %v1111_v29  ;;  %v1136_v28 = vadd.s32 400, %v2113_v41  ;;  %v1134_v29 = vadd.s32 384, %v2113_v41 }
  0x53   : > { %v2332_v44 = vadd.s32 %v2117_v43, %v1134_v29 }
  0x55   : > { %2895 = vst [vmem:[#allocation16_spill] sm:$0xff] %v2332_v44 }
  0x56   : > { %1897 = vmatmul.mubr.bf16.gmra.mrb[20].mxu0 %v1983_v30  ;;  %1929 = vmatmul.mubr.bf16.gmra.mrb[20].mxu1 %v1999_v31  ;;  %v1116_v30 = vadd.s32 240, %v2113_v41  ;;  %v1114_v31 = vadd.s32 224, %v2113_v41 }
  0x57   : > { %1900 = vmatprep.mubr.bf16.mxu0 %v1984_v32  ;;  %1932 = vmatprep.mubr.bf16.mxu1 %v2000_v33  ;;  %v1117_v32 = vadd.s32 248, %v2113_v41  ;;  %v1115_v33 = vadd.s32 232, %v2113_v41 }
  0x58   : > { %v2242_v47 = vadd.s32 %v2117_v43, %v1116_v30  ;;  %v2246_v49 = vadd.s32 %v2117_v43, %v1114_v31  ;;  %v1137_v30 = vadd.s32 408, %v2113_v41  ;;  %v1135_v31 = vadd.s32 392, %v2113_v41 }
  0x59   : > { %v2249_v57 = vadd.s32 %v2117_v43, %v1117_v32  ;;  %v2252_v58 = vadd.s32 %v2117_v43, %v1115_v33  ;;  %v1140_v32 = vadd.s32 432, %v2113_v41  ;;  %v2294_v33 = vadd.s32 %v2117_v43, %v1128_v3 }
  0x5a   : > { %v2318_v3 = vadd.s32 %v2117_v43, %v1130_v14  ;;  %v2335_v14 = vadd.s32 %v2117_v43, %v1137_v30 }
  0x5b   : > { %2886 = vst [vmem:[#allocation7_spill] sm:$0xff] %v2294_v33 }
  0x5c   : > { %2891 = vst [vmem:[#allocation12_spill] sm:$0xff] %v2318_v3  ;;  %2896 = vst [vmem:[#allocation17_spill] sm:$0xff] %v2335_v14 }
  0x5e   : > { %1901 = vmatmul.mubr.bf16.gmra.mrb[24].mxu0 %v1985_v34  ;;  %1933 = vmatmul.mubr.bf16.gmra.mrb[24].mxu1 %v2001_v35  ;;  %v1120_v34 = vadd.s32 272, %v2113_v41  ;;  %v1118_v35 = vadd.s32 256, %v2113_v41 }
  0x5f   : > { %1904 = vmatprep.mubr.bf16.mxu0 %v1986_v36  ;;  %1936 = vmatprep.mubr.bf16.mxu1 %v2002_v37  ;;  %v1121_v36 = vadd.s32 280, %v2113_v41  ;;  %v1119_v37 = vadd.s32 264, %v2113_v41 }
  0x60   : > { %v2255_v60 = vadd.s32 %v2117_v43, %v1120_v34  ;;  %v2258_v61 = vadd.s32 %v2117_v43, %v1118_v35  ;;  %v2297_v34 = vadd.s32 %v2117_v43, %v1126_v4  ;;  %v1138_v35 = vadd.s32 416, %v2113_v41 }
  0x61   : > { %v2261_v62 = vadd.s32 %v2117_v43, %v1121_v36  ;;  %v2264_v63 = vadd.s32 %v2117_v43, %v1119_v37  ;;  %v1141_v36 = vadd.s32 440, %v2113_v41  ;;  %v2304_v37 = vld [vmem:[%s2854_s2] ss:$0 sm:$0xff] }
  0x62   : > { %2887 = vst [vmem:[#allocation8_spill] sm:$0xff] %v2297_v34  ;;  %v2324_v34 = vadd.s32 %v2117_v43, %v1131_v26  ;;  %v2341_v26 = vadd.s32 %v2117_v43, %v1140_v32  ;;  %v2346_v3 = vadd.s32 %v2117_v43, %v1138_v35 }
  0x63   : > { %v2349_v29 = vadd.s32 %v2117_v43, %v1141_v36 }
  0x64   : > { %2893 = vst [vmem:[#allocation14_spill] sm:$0xff] %v2324_v34  ;;  %2898 = vst [vmem:[#allocation19_spill] sm:$0xff] %v2341_v26 }
  0x65   : > { %2899 = vst [vmem:[#allocation20_spill] sm:$0xff] %v2346_v3  ;;  %2900 = vst [vmem:[#allocation21_spill] sm:$0xff] %v2349_v29 }
  0x66   : > { %1905 = vmatmul.mubr.bf16.gmra.mrb[28].mxu0 %v1987_v38  ;;  %1937 = vmatmul.mubr.bf16.gmra.mrb[28].mxu1 %v2003_v39  ;;  %v1124_v38 = vadd.s32 304, %v2113_v41  ;;  %v2228_v39 = vadd.s32 %v2117_v43, %v1112_v25  ;;  %v1133_v25 = vadd.s32 376, %v2113_v41 }
  0x68   : > { %v2267_v0 = vadd.s32 %v2117_v43, %v1124_v38  ;;  %v2308_v38 = vadd.s32 %v2117_v43, %v1129_v6  ;;  %v2321_v4 = vadd.s32 %v2117_v43, %v1133_v25  ;;  %v2327_v6 = vadd.s32 %v2117_v43, %v1136_v28 }
  0x69   : > { %v2338_v25 = vadd.s32 %v2117_v43, %v1135_v31 }
  0x6a   : > { %2882 = vst [vmem:[#allocation3_spill] sm:$0xff] %v2267_v0  ;;  %2888 = vst [vmem:[#allocation9_spill] sm:$0xff] %v2308_v38 }
  0x6b   : > { %2892 = vst [vmem:[#allocation13_spill] sm:$0xff] %v2321_v4  ;;  %2894 = vst [vmem:[#allocation15_spill] sm:$0xff] %v2327_v6 }
  0x6c   : > { %2897 = vst [vmem:[#allocation18_spill] sm:$0xff] %v2338_v25  ;;  %v1142_v25 = vadd.s32 448, %v2113_v41 }
 0x101   : > { %v1878_v9 = vpop.f32.mrb[0].mxu0  ;;  %v1910_v10 = vpop.f32.mrb[0].mxu1 }
 0x102   : > { %v583_v28 = vadd.f32 %v1878_v9, %v2304_v37  ;;  %v574_v6 = vpop.f32.mrb[1].mxu0  ;;  %v711_v4 = vadd.f32 %v1910_v10, %v2304_v37  ;;  %v702_v34 = vpop.f32.mrb[1].mxu1  ;;  %v2358_v9 = vadd.s32 %v2117_v43, %v1139_v48  ;;  %v1144_v10 = vadd.s32 464, %v2113_v41 }
 0x103   : > { %v575_v30 = vadd.f32 %v2304_v37, %v574_v6  ;;  %v1879_v14 = vpop.f32.mrb[2].mxu0  ;;  %v2353_v31 = vadd.f32 %v2304_v37, %v702_v34  ;;  %v2355_v32 = vpop.f32.mrb[2].mxu1 }
 0x104   : > { %2901 = vst [vmem:[#allocation22_spill] sm:$0xff] %v2358_v9  ;;  %vm831_vm4 = vcmp.ge.f32.partialorder %v583_v28, 0.0  ;;  %v895_v35 = vmul.f32 0.2, %v583_v28  ;;  %v586_v36 = vadd.f32 %v1879_v14, %v2304_v37  ;;  %v577_v6 = vpop.f32.mrb[3].mxu0  ;;  %vm863_vm5 = vcmp.ge.f32.partialorder %v711_v4, 0.0 }
 0x105   : > { %v2367_v34 = vpop.f32.mrb[3].mxu1  ;;  %vm829_vm6 = vcmp.ge.f32.partialorder %v575_v30, 0.0  ;;  %v893_v48 = vmul.f32 0.2, %v575_v30  ;;  %v578_v29 = vadd.f32 %v2304_v37, %v577_v6  ;;  %v927_v9 = vmul.f32 0.2, %v711_v4 }
 0x106   : > { %v959_v26 = vsel %vm831_vm4, %v583_v28, %v895_v35  ;;  %vm832_vm8 = vcmp.ge.f32.partialorder %v586_v36, 0.0  ;;  %v896_v3 = vmul.f32 0.2, %v586_v36  ;;  %v1145_v35 = vadd.s32 472, %v2113_v41 }
 0x107   : > { %1023 = vst [vmem:[%s2364_s20 + $0x10] sm:$0xff] %v959_v26  ;;  %v1410_v14 = vsel %vm1218_vm0, %v959_v26, 0.0  ;;  %v957_v44 = vsel %vm829_vm6, %v575_v30, %v893_v48  ;;  %vm830_vm9 = vcmp.ge.f32.partialorder %v578_v29, 0.0  ;;  %v894_v38 = vmul.f32 0.2, %v578_v29 }
 0x108   : > { %1021 = vst [vmem:[%s2364_s20] sm:$0xff] %v957_v44  ;;  %v1408_v6 = vsel %vm1216_vm1, %v957_v44, 0.0  ;;  %v960_v42 = vsel %vm832_vm8, %v586_v36, %v896_v3  ;;  %v2381_v28 = vsel %vm863_vm5, %v711_v4, %v927_v9  ;;  %vm861_vm12 = vcmp.ge.f32.partialorder %v2353_v31, 0.0 }
 0x109   : > { %1024 = vst [vmem:[%s2364_s20 + $0x18] sm:$0xff] %v960_v42  ;;  %v958_v50 = vsel %vm830_vm9, %v578_v29, %v894_v38  ;;  %v1882_v26 = vpop.f32.mrb[4].mxu0  ;;  %1055 = vst [vmem:[%s2364_s20 + $0x110] sm:$0xff] %v2381_v28  ;;  %v2388_v51 = vpop.f32.mrb[4].mxu1  ;;  %v2391_v44 = vadd.s32 %v2117_v43, %v1144_v10  ;;  %v2394_v3 = vadd.s32 456, %v2113_v41  ;;  %v1543_v30 = vmul.f32 %v1410_v14, %v1410_v14 }
 0x10a   : > { %2902 = vst [vmem:[#allocation23_spill] sm:$0xff] %v2388_v51  ;;  %v1541_v4 = vmul.f32 %v1408_v6, %v1408_v6  ;;  %1022 = vst [vmem:[%s2364_s20 + $0x8] sm:$0xff] %v958_v50  ;;  %v1409_v9 = vsel %vm1217_vm2, %v958_v50, 0.0  ;;  %v599_v38 = vadd.f32 %v1882_v26, %v2304_v37  ;;  %v590_v29 = vpop.f32.mrb[5].mxu0  ;;  %v2401_v36 = vpop.f32.mrb[5].mxu1  ;;  %v1411_v53 = vsel %vm1219_vm3, %v960_v42, 0.0 }
 0x10b   : > { %2903 = vst [vmem:[#allocation24_spill] sm:$0xff] %v2391_v44  ;;  %2904 = vst [vmem:[#allocation25_spill] sm:$0xff] %v2401_v36  ;;  %v1472_v48 = vadd.f32 %v1409_v9, %v1408_v6  ;;  %v1542_v33 = vmul.f32 %v1409_v9, %v1409_v9  ;;  %v591_v10 = vadd.f32 %v2304_v37, %v590_v29  ;;  %v1883_v44 = vpop.f32.mrb[6].mxu0  ;;  %v925_v2 = vmul.f32 0.2, %v2353_v31  ;;  %v2405_v5 = vpop.f32.mrb[6].mxu1 }
 0x10c   : > { %2905 = vst [vmem:[#allocation26_spill] sm:$0xff] %v2405_v5  ;;  %vm835_vm14 = vcmp.ge.f32.partialorder %v599_v38, 0.0  ;;  %v899_v50 = vmul.f32 0.2, %v599_v38  ;;  %v602_v26 = vadd.f32 %v1883_v44, %v2304_v37  ;;  %v593_v1 = vpop.f32.mrb[7].mxu0  ;;  %v2410_v0 = vpop.f32.mrb[7].mxu1  ;;  %v1544_v42 = vmul.f32 %v1411_v53, %v1411_v53 }
 0x10d   : > { %2906 = vst [vmem:[#allocation27_spill] sm:$0xff] %v2410_v0  ;;  %v1473_v6 = vadd.f32 %v1472_v48, %v1410_v14  ;;  %v1605_v9 = vadd.f32 %v1542_v33, %v1541_v4  ;;  %vm833_vm15 = vcmp.ge.f32.partialorder %v591_v10, 0.0  ;;  %v897_v29 = vmul.f32 0.2, %v591_v10 }
 0x10e   : > { %vm1224_vm0 = vcmp.lt.s32.totalorder %v2167_v8, 1024  ;;  %v963_v36 = vsel %vm835_vm14, %v599_v38, %v899_v50  ;;  %vm836_vm1 = vcmp.ge.f32.partialorder %v602_v26, 0.0  ;;  %v900_v5 = vmul.f32 0.2, %v602_v26 }
 0x10f   : > { %v594_v52 = vadd.f32 %v2304_v37, %v593_v1  ;;  %vm1226_vm2 = vcmp.lt.s32.totalorder %v2164_v7, 1024  ;;  %v1606_v44 = vadd.f32 %v1605_v9, %v1543_v30  ;;  %1027 = vst [vmem:[%s2364_s20 + $0x30] sm:$0xff] %v963_v36  ;;  %v961_v51 = vsel %vm833_vm15, %v591_v10, %v897_v29 }
 0x110   : > { %v1474_v0 = vadd.f32 %v1473_v6, %v1411_v53  ;;  %1025 = vst [vmem:[%s2364_s20 + $0x20] sm:$0xff] %v961_v51  ;;  %v1412_v33 = vsel %vm1220_vm7, %v961_v51, 0.0  ;;  %v964_v14 = vsel %vm836_vm1, %v602_v26, %v900_v5  ;;  %vm1227_vm3 = vcmp.lt.s32.totalorder %v2172_v11, 1024 }
 0x111   : > { %v2421_v4 = vadd.s32 %v2117_v43, %v1142_v25  ;;  %v2424_v1 = vadd.s32 %v2117_v43, %v1145_v35  ;;  %v1545_v48 = vmul.f32 %v1412_v33, %v1412_v33  ;;  %v1607_v50 = vadd.f32 %v1606_v44, %v1544_v42  ;;  %1028 = vst [vmem:[%s2364_s20 + $0x38] sm:$0xff] %v964_v14  ;;  %v1886_v30 = vpop.f32.mrb[8].mxu0  ;;  %v2428_v55 = vpop.f32.mrb[8].mxu1 }
 0x112   : > { %v1475_v38 = vadd.f32 %v1474_v0, %v1412_v33  ;;  %vm834_vm4 = vcmp.ge.f32.partialorder %v594_v52, 0.0  ;;  %vm1225_vm5 = vcmp.lt.s32.totalorder %v2175_v12, 1024  ;;  %v898_v5 = vmul.f32 0.2, %v594_v52  ;;  %v606_v10 = vpop.f32.mrb[9].mxu0  ;;  %v2440_v35 = vpop.f32.mrb[9].mxu1 }
 0x113   : > { %2907 = vst [vmem:[#allocation28_spill] sm:$0xff] %v2424_v1  ;;  %v615_v51 = vadd.f32 %v1886_v30, %v2304_v37  ;;  %v2434_v25 = vsel %vm861_vm12, %v2353_v31, %v925_v2  ;;  %v2438_v0 = vadd.f32 %v2355_v32, %v2304_v37  ;;  %v1414_v53 = vsel %vm1222_vm10, %v963_v36, 0.0  ;;  %v1887_v29 = vpop.f32.mrb[10].mxu0  ;;  %v2449_v2 = vpop.f32.mrb[10].mxu1 }
 0x114   : > { %v1608_v26 = vadd.f32 %v1607_v50, %v1545_v48  ;;  %v1415_v6 = vsel %vm1223_vm11, %v964_v14, 0.0  ;;  %v607_v9 = vadd.f32 %v2304_v37, %v606_v10  ;;  %1053 = vst [vmem:[%s2364_s20 + $0x100] sm:$0xff] %v2434_v25  ;;  %v962_v31 = vsel %vm834_vm4, %v594_v52, %v898_v5  ;;  %v609_v54 = vpop.f32.mrb[11].mxu0  ;;  %v2453_v36 = vpop.f32.mrb[11].mxu1 }
 0x115   : > { %vm839_vm6 = vcmp.ge.f32.partialorder %v615_v51, 0.0  ;;  %v903_v32 = vmul.f32 0.2, %v615_v51  ;;  %v618_v42 = vadd.f32 %v1887_v29, %v2304_v37  ;;  %1026 = vst [vmem:[%s2364_s20 + $0x28] sm:$0xff] %v962_v31  ;;  %v1413_v56 = vsel %vm1221_vm13, %v962_v31, 0.0 }
 0x116   : > { %vm837_vm7 = vcmp.ge.f32.partialorder %v607_v9, 0.0  ;;  %v901_v44 = vmul.f32 0.2, %v607_v9  ;;  %v610_v33 = vadd.f32 %v2304_v37, %v609_v54  ;;  %vm1228_vm8 = vcmp.lt.s32.totalorder %v2182_v15, 1024 }
 0x117   : > { %v1476_v52 = vadd.f32 %v1475_v38, %v1413_v56  ;;  %v1546_v14 = vmul.f32 %v1413_v56, %v1413_v56  ;;  %v967_v48 = vsel %vm839_vm6, %v615_v51, %v903_v32  ;;  %vm840_vm9 = vcmp.ge.f32.partialorder %v618_v42, 0.0 }
 0x118   : > { %v1547_v50 = vmul.f32 %v1414_v53, %v1414_v53  ;;  %v1548_v30 = vmul.f32 %v1415_v6, %v1415_v6  ;;  %1031 = vst [vmem:[%s2364_s20 + $0x50] sm:$0xff] %v967_v48  ;;  %v965_v5 = vsel %vm837_vm7, %v607_v9, %v901_v44  ;;  %v904_v10 = vmul.f32 0.2, %v618_v42 }
 0x119   : > { %v1477_v29 = vadd.f32 %v1476_v52, %v1414_v53  ;;  %v1609_v59 = vadd.f32 %v1608_v26, %v1546_v14  ;;  %1029 = vst [vmem:[%s2364_s20 + $0x40] sm:$0xff] %v965_v5  ;;  %v1416_v31 = vsel %vm1224_vm0, %v965_v5, 0.0  ;;  %vm838_vm10 = vcmp.ge.f32.partialorder %v610_v33, 0.0  ;;  %v1890_v51 = vpop.f32.mrb[12].mxu0  ;;  %v2468_v9 = vpop.f32.mrb[12].mxu1 }
 0x11a   : > { %v1418_v54 = vsel %vm1226_vm2, %v967_v48, 0.0  ;;  %v968_v38 = vsel %vm840_vm9, %v618_v42, %v904_v10  ;;  %v902_v56 = vmul.f32 0.2, %v610_v33  ;;  %vm1230_vm11 = vcmp.lt.s32.totalorder %v2178_v13, 1024  ;;  %v622_v44 = vpop.f32.mrb[13].mxu0  ;;  %v2474_v7 = vpop.f32.mrb[13].mxu1 }
 0x11b   : > { %vm864_vm12 = vcmp.ge.f32.partialorder %v2438_v0, 0.0  ;;  %v1610_v32 = vadd.f32 %v1609_v59, %v1547_v50  ;;  %v1478_v53 = vadd.f32 %v1477_v29, %v1415_v6  ;;  %v1549_v26 = vmul.f32 %v1416_v31, %v1416_v31  ;;  %1032 = vst [vmem:[%s2364_s20 + $0x58] sm:$0xff] %v968_v38  ;;  %v1891_v6 = vpop.f32.mrb[14].mxu0  ;;  %v2481_v50 = vpop.f32.mrb[14].mxu1 }
 0x11c   : > { %v631_v8 = vadd.f32 %v1890_v51, %v2304_v37  ;;  %vm1231_vm13 = vcmp.lt.s32.totalorder %v2185_v16, 1024  ;;  %vm1229_vm14 = vcmp.lt.s32.totalorder %v2188_v17, 1024  ;;  %v1419_v42 = vsel %vm1227_vm3, %v968_v38, 0.0  ;;  %v625_v59 = vpop.f32.mrb[15].mxu0  ;;  %v2486_v51 = vpop.f32.mrb[15].mxu1 }
 0x11d   : > { %v966_v52 = vsel %vm838_vm10, %v610_v33, %v902_v56  ;;  %v623_v14 = vadd.f32 %v2304_v37, %v622_v44  ;;  %v928_v48 = vmul.f32 0.2, %v2438_v0  ;;  %v1479_v5 = vadd.f32 %v1478_v53, %v1416_v31 }
 0x11e   : > { %v1611_v10 = vadd.f32 %v1610_v32, %v1548_v30  ;;  %1030 = vst [vmem:[%s2364_s20 + $0x48] sm:$0xff] %v966_v52  ;;  %v1417_v29 = vsel %vm1225_vm5, %v966_v52, 0.0  ;;  %vm843_vm15 = vcmp.ge.f32.partialorder %v631_v8, 0.0  ;;  %v907_v33 = vmul.f32 0.2, %v631_v8 }
 0x11f   : > { %v1550_v11 = vmul.f32 %v1417_v29, %v1417_v29  ;;  %vm841_vm0 = vcmp.ge.f32.partialorder %v623_v14, 0.0  ;;  %v905_v38 = vmul.f32 0.2, %v623_v14  ;;  %v1480_v44 = vadd.f32 %v1479_v5, %v1417_v29 }
 0x120   : > { %v1612_v56 = vadd.f32 %v1611_v10, %v1549_v26  ;;  %v634_v31 = vadd.f32 %v1891_v6, %v2304_v37  ;;  %v626_v30 = vadd.f32 %v2304_v37, %v625_v59  ;;  %v971_v32 = vsel %vm843_vm15, %v631_v8, %v907_v33 }
 0x121   : > { %v969_v12 = vsel %vm841_vm0, %v623_v14, %v905_v38  ;;  %vm1232_vm1 = vcmp.lt.s32.totalorder %v2194_v19, 1024  ;;  %v2494_v53 = vsel %vm864_vm12, %v2438_v0, %v928_v48  ;;  %v2498_v52 = vadd.s32 %v2117_v43, %v2394_v3  ;;  %1035 = vst [vmem:[%s2364_s20 + $0x70] sm:$0xff] %v971_v32  ;;  %v1894_v0 = vpop.f32.mrb[16].mxu0  ;;  %v2507_v48 = vpop.f32.mrb[16].mxu1 }
 0x122   : > { %v1551_v1 = vmul.f32 %v1418_v54, %v1418_v54  ;;  %v1481_v26 = vadd.f32 %v1480_v44, %v1418_v54  ;;  %v1613_v5 = vadd.f32 %v1612_v56, %v1550_v11  ;;  %1033 = vst [vmem:[%s2364_s20 + $0x60] sm:$0xff] %v969_v12  ;;  %v1420_v8 = vsel %vm1228_vm8, %v969_v12, 0.0  ;;  %1056 = vst [vmem:[%s2364_s20 + $0x118] sm:$0xff] %v2494_v53  ;;  %v638_v59 = vpop.f32.mrb[17].mxu0  ;;  %v2510_v15 = vpop.f32.mrb[17].mxu1 }
 0x123   : > { %v1552_v14 = vmul.f32 %v1419_v42, %v1419_v42  ;;  %v1553_v6 = vmul.f32 %v1420_v8, %v1420_v8  ;;  %vm844_vm2 = vcmp.ge.f32.partialorder %v634_v31, 0.0  ;;  %v908_v10 = vmul.f32 0.2, %v634_v31  ;;  %v1895_v56 = vpop.f32.mrb[18].mxu0  ;;  %v2515_v44 = vpop.f32.mrb[18].mxu1 }
 0x124   : > { %vm1234_vm3 = vcmp.lt.s32.totalorder %v2191_v18, 1024  ;;  %v1614_v3 = vadd.f32 %v1613_v5, %v1551_v1  ;;  %v1482_v29 = vadd.f32 %v1481_v26, %v1419_v42  ;;  %vm842_vm4 = vcmp.ge.f32.partialorder %v626_v30, 0.0  ;;  %v641_v5 = vpop.f32.mrb[19].mxu0 }
 0x125   : > { %v906_v54 = vmul.f32 0.2, %v626_v30  ;;  %vm1235_vm5 = vcmp.lt.s32.totalorder %v2197_v20, 1024  ;;  %v972_v11 = vsel %vm844_vm2, %v634_v31, %v908_v10  ;;  %v647_v33 = vadd.f32 %v1894_v0, %v2304_v37  ;;  %v2524_v10 = vpop.f32.mrb[19].mxu1 }
 0x126   : > { %v639_v38 = vadd.f32 %v2304_v37, %v638_v59  ;;  %vm1233_vm6 = vcmp.lt.s32.totalorder %v2200_v21, 1024  ;;  %v2518_v1 = vadd.s32 496, %v2113_v41  ;;  %v1422_v42 = vsel %vm1230_vm11, %v971_v32, 0.0  ;;  %1036 = vst [vmem:[%s2364_s20 + $0x78] sm:$0xff] %v972_v11 }
 0x127   : > { %v1483_v12 = vadd.f32 %v1482_v29, %v1420_v8  ;;  %v1615_v26 = vadd.f32 %v1614_v3, %v1552_v14  ;;  %v970_v31 = vsel %vm842_vm4, %v626_v30, %v906_v54  ;;  %v1423_v0 = vsel %vm1231_vm13, %v972_v11, 0.0 }
 0x128   : > { %2908 = vst [vmem:[#allocation29_spill] sm:$0xff] %v2518_v1  ;;  %1034 = vst [vmem:[%s2364_s20 + $0x68] sm:$0xff] %v970_v31  ;;  %v1421_v59 = vsel %vm1229_vm14, %v970_v31, 0.0  ;;  %vm847_vm7 = vcmp.ge.f32.partialorder %v647_v33, 0.0  ;;  %v911_v1 = vmul.f32 0.2, %v647_v33  ;;  %v650_v16 = vadd.f32 %v1895_v56, %v2304_v37 }
 0x129   : > { %v1616_v13 = vadd.f32 %v1615_v26, %v1553_v6  ;;  %v1484_v32 = vadd.f32 %v1483_v12, %v1421_v59  ;;  %v1554_v8 = vmul.f32 %v1421_v59, %v1421_v59  ;;  %vm845_vm8 = vcmp.ge.f32.partialorder %v639_v38, 0.0  ;;  %v1898_v31 = vpop.f32.mrb[20].mxu0 }
 0x12a   : > { %vm1238_vm9 = vcmp.lt.s32.totalorder %v2203_v22, 1024  ;;  %vm1236_vm10 = vcmp.lt.s32.totalorder %v2206_v23, 1024  ;;  %v975_v30 = vsel %vm847_vm7, %v647_v33, %v911_v1  ;;  %v909_v14 = vmul.f32 0.2, %v639_v38  ;;  %v2540_v33 = vpop.f32.mrb[20].mxu1 }
 0x12b   : > { %v642_v3 = vadd.f32 %v2304_v37, %v641_v5  ;;  %v1555_v17 = vmul.f32 %v1422_v42, %v1422_v42  ;;  %v1485_v29 = vadd.f32 %v1484_v32, %v1422_v42  ;;  %v1617_v54 = vadd.f32 %v1616_v13, %v1554_v8  ;;  %1039 = vst [vmem:[%s2364_s20 + $0x90] sm:$0xff] %v975_v30  ;;  %v654_v5 = vpop.f32.mrb[21].mxu0  ;;  %v2545_v59 = vpop.f32.mrb[21].mxu1 }
 0x12c   : > { %v2538_v6 = vadd.f32 %v2304_v37, %v2367_v34  ;;  %v1556_v11 = vmul.f32 %v1423_v0, %v1423_v0  ;;  %v973_v12 = vsel %vm845_vm8, %v639_v38, %v909_v14  ;;  %vm848_vm11 = vcmp.ge.f32.partialorder %v650_v16, 0.0  ;;  %v1899_v8 = vpop.f32.mrb[22].mxu0  ;;  %v2550_v14 = vpop.f32.mrb[22].mxu1 }
 0x12d   : > { %v912_v26 = vmul.f32 0.2, %v650_v16  ;;  %v1618_v1 = vadd.f32 %v1617_v54, %v1555_v17  ;;  %1037 = vst [vmem:[%s2364_s20 + $0x80] sm:$0xff] %v973_v12  ;;  %v1424_v56 = vsel %vm1232_vm1, %v973_v12, 0.0  ;;  %v1486_v42 = vadd.f32 %v1485_v29, %v1423_v0  ;;  %v2556_v54 = vpop.f32.mrb[23].mxu1 }
 0x12e   : > { %vm846_vm12 = vcmp.ge.f32.partialorder %v642_v3, 0.0  ;;  %v1557_v34 = vmul.f32 %v1424_v56, %v1424_v56  ;;  %v910_v32 = vmul.f32 0.2, %v642_v3  ;;  %v663_v38 = vadd.f32 %v1898_v31, %v2304_v37 }
 0x12f   : > { %v976_v13 = vsel %vm848_vm11, %v650_v16, %v912_v26  ;;  %vm1239_vm13 = vcmp.lt.s32.totalorder %v2209_v24, 1024  ;;  %vm1237_vm14 = vcmp.lt.s32.totalorder %v2214_v27, 1024  ;;  %v1426_v19 = vsel %vm1234_vm3, %v975_v30, 0.0  ;;  %v657_v16 = vpop.f32.mrb[23].mxu0 }
 0x130   : > { %v1487_v0 = vadd.f32 %v1486_v42, %v1424_v56  ;;  %v1619_v17 = vadd.f32 %v1618_v1, %v1556_v11  ;;  %1040 = vst [vmem:[%s2364_s20 + $0x98] sm:$0xff] %v976_v13  ;;  %v655_v29 = vadd.f32 %v2304_v37, %v654_v5  ;;  %v1427_v12 = vsel %vm1235_vm5, %v976_v13, 0.0 }
 0x131   : > { %v974_v26 = vsel %vm846_vm12, %v642_v3, %v910_v32  ;;  %vm851_vm15 = vcmp.ge.f32.partialorder %v663_v38, 0.0  ;;  %v915_v31 = vmul.f32 0.2, %v663_v38  ;;  %vm1242_vm1 = vcmp.lt.s32.totalorder %v2228_v39, 1024 }
 0x132   : > { %v1620_v43 = vadd.f32 %v1619_v17, %v1557_v34  ;;  %1038 = vst [vmem:[%s2364_s20 + $0x88] sm:$0xff] %v974_v26  ;;  %v1425_v18 = vsel %vm1233_vm6, %v974_v26, 0.0  ;;  %vm849_vm0 = vcmp.ge.f32.partialorder %v655_v29, 0.0  ;;  %v913_v30 = vmul.f32 0.2, %v655_v29  ;;  %v2574_v17 = vpop.f32.mrb[24].mxu1 }
 0x133   : > { %v1488_v11 = vadd.f32 %v1487_v0, %v1425_v18  ;;  %v1558_v1 = vmul.f32 %v1425_v18, %v1425_v18  ;;  %v979_v56 = vsel %vm851_vm15, %v663_v38, %v915_v31  ;;  %v666_v20 = vadd.f32 %v1899_v8, %v2304_v37  ;;  %v1902_v38 = vpop.f32.mrb[24].mxu0 }
 0x134   : > { %v1559_v42 = vmul.f32 %v1426_v19, %v1426_v19  ;;  %v1560_v5 = vmul.f32 %v1427_v12, %v1427_v12  ;;  %1043 = vst [vmem:[%s2364_s20 + $0xb0] sm:$0xff] %v979_v56  ;;  %v977_v3 = vsel %vm849_vm0, %v655_v29, %v913_v30  ;;  %v658_v34 = vadd.f32 %v2304_v37, %v657_v16  ;;  %v670_v29 = vpop.f32.mrb[25].mxu0  ;;  %v2576_v16 = vpop.f32.mrb[25].mxu1 }
 0x135   : > { %vm1240_vm2 = vcmp.lt.s32.totalorder %v2231_v40, 1024  ;;  %v1489_v21 = vadd.f32 %v1488_v11, %v1426_v19  ;;  %v1621_v13 = vadd.f32 %v1620_v43, %v1558_v1  ;;  %v1430_v32 = vsel %vm1238_vm9, %v979_v56, 0.0  ;;  %1041 = vst [vmem:[%s2364_s20 + $0xa0] sm:$0xff] %v977_v3  ;;  %v1903_v18 = vpop.f32.mrb[26].mxu0  ;;  %v2579_v23 = vpop.f32.mrb[26].mxu1 }
 0x136   : > { %v1428_v0 = vsel %vm1236_vm10, %v977_v3, 0.0  ;;  %vm852_vm3 = vcmp.ge.f32.partialorder %v666_v20, 0.0  ;;  %v916_v26 = vmul.f32 0.2, %v666_v20  ;;  %vm850_vm4 = vcmp.ge.f32.partialorder %v658_v34, 0.0  ;;  %v673_v56 = vpop.f32.mrb[27].mxu0 }
 0x137   : > { %v1561_v8 = vmul.f32 %v1428_v0, %v1428_v0  ;;  %v1622_v31 = vadd.f32 %v1621_v13, %v1559_v42  ;;  %v1490_v43 = vadd.f32 %v1489_v21, %v1427_v12  ;;  %v914_v19 = vmul.f32 0.2, %v658_v34  ;;  %v2585_v42 = vpop.f32.mrb[27].mxu1 }
 0x138   : > { %v679_v22 = vadd.f32 %v1902_v38, %v2304_v37  ;;  %v980_v30 = vsel %vm852_vm3, %v666_v20, %v916_v26  ;;  %v671_v11 = vadd.f32 %v2304_v37, %v670_v29  ;;  %v682_v1 = vadd.f32 %v1903_v18, %v2304_v37 }
 0x139   : > { %vm1241_vm5 = vcmp.lt.s32.totalorder %v2239_v46, 1024  ;;  %vm862_vm6 = vcmp.ge.f32.partialorder %v2538_v6, 0.0  ;;  %v1563_v12 = vmul.f32 %v1430_v32, %v1430_v32  ;;  %v1491_v3 = vadd.f32 %v1490_v43, %v1428_v0  ;;  %1044 = vst [vmem:[%s2364_s20 + $0xb8] sm:$0xff] %v980_v30 }
 0x13a   : > { %v1623_v21 = vadd.f32 %v1622_v31, %v1560_v5  ;;  %v978_v13 = vsel %vm850_vm4, %v658_v34, %v914_v19  ;;  %vm1243_vm7 = vcmp.lt.s32.totalorder %v2236_v45, 1024  ;;  %v1431_v20 = vsel %vm1239_vm13, %v980_v30, 0.0  ;;  %v2602_v30 = vpop.f32.mrb[28].mxu1 }
 0x13b   : > { %1042 = vst [vmem:[%s2364_s20 + $0xa8] sm:$0xff] %v978_v13  ;;  %v1429_v38 = vsel %vm1237_vm14, %v978_v13, 0.0  ;;  %vm855_vm8 = vcmp.ge.f32.partialorder %v679_v22, 0.0  ;;  %v919_v26 = vmul.f32 0.2, %v679_v22  ;;  %vm1246_vm9 = vcmp.lt.s32.totalorder %v2242_v47, 1024 }
 0x13c   : > { %v1624_v29 = vadd.f32 %v1623_v21, %v1561_v8  ;;  %v1492_v0 = vadd.f32 %v1491_v3, %v1429_v38  ;;  %v1562_v5 = vmul.f32 %v1429_v38, %v1429_v38  ;;  %vm853_vm10 = vcmp.ge.f32.partialorder %v671_v11, 0.0  ;;  %v1906_v8 = vpop.f32.mrb[28].mxu0  ;;  %v2607_v38 = vpop.f32.mrb[29].mxu1  ;;  %v2911_v47 = vld [vmem:[#allocation23_spill] sm:$0xff] }
 0x13d   : > { %v983_v31 = vsel %vm855_vm8, %v679_v22, %v919_v26  ;;  %v917_v34 = vmul.f32 0.2, %v671_v11  ;;  %vm856_vm11 = vcmp.ge.f32.partialorder %v682_v1, 0.0  ;;  %v920_v43 = vmul.f32 0.2, %v682_v1  ;;  %v686_v13 = vpop.f32.mrb[29].mxu0 }
 0x13e   : > { %vm1250_vm12 = vcmp.lt.s32.totalorder %v2255_v60, 1024  ;;  %v1493_v24 = vadd.f32 %v1492_v0, %v1430_v32  ;;  %v1625_v19 = vadd.f32 %v1624_v29, %v1562_v5  ;;  %1047 = vst [vmem:[%s2364_s20 + $0xd0] sm:$0xff] %v983_v31  ;;  %v1434_v27 = vsel %vm1242_vm1, %v983_v31, 0.0  ;;  %v1907_v0 = vpop.f32.mrb[30].mxu0 }
 0x13f   : > { %v674_v18 = vadd.f32 %v2304_v37, %v673_v56  ;;  %vm1244_vm13 = vcmp.lt.s32.totalorder %v2246_v49, 1024  ;;  %v981_v22 = vsel %vm853_vm10, %v671_v11, %v917_v34  ;;  %v984_v3 = vsel %vm856_vm11, %v682_v1, %v920_v43  ;;  %v2614_v11 = vpop.f32.mrb[30].mxu1  ;;  %v689_v34 = vpop.f32.mrb[31].mxu0 }
 0x140   : > { %v695_v21 = vadd.f32 %v1906_v8, %v2304_v37  ;;  %vm1248_vm14 = vcmp.lt.s32.totalorder %v2258_v61, 1024  ;;  %v926_v32 = vmul.f32 0.2, %v2538_v6  ;;  %v1564_v39 = vmul.f32 %v1431_v20, %v1431_v20  ;;  %1045 = vst [vmem:[%s2364_s20 + $0xc0] sm:$0xff] %v981_v22  ;;  %1048 = vst [vmem:[%s2364_s20 + $0xd8] sm:$0xff] %v984_v3  ;;  %v2616_v43 = vpop.f32.mrb[31].mxu1 }
 0x141   : > { %v1626_v26 = vadd.f32 %v1625_v19, %v1563_v12  ;;  %v1432_v56 = vsel %vm1240_vm2, %v981_v22, 0.0  ;;  %v1494_v29 = vadd.f32 %v1493_v24, %v1431_v20  ;;  %vm1245_vm15 = vcmp.lt.s32.totalorder %v2252_v58, 1024  ;;  %2909 = vst [vmem:[#allocation30_spill] sm:$0xff] %v2614_v11  ;;  %2910 = vst [vmem:[#allocation31_spill] sm:$0xff] %v2616_v43  ;;  %v2917_v58 = vld [vmem:[#allocation6_spill] sm:$0xff] }
 0x142   : > { %v1567_v1 = vmul.f32 %v1434_v27, %v1434_v27  ;;  %v1565_v5 = vmul.f32 %v1432_v56, %v1432_v56  ;;  %vm854_vm0 = vcmp.ge.f32.partialorder %v674_v18, 0.0  ;;  %v918_v31 = vmul.f32 0.2, %v674_v18 }
 0x143   : > { %v1495_v12 = vadd.f32 %v1494_v29, %v1432_v56  ;;  %v1627_v19 = vadd.f32 %v1626_v26, %v1564_v39  ;;  %vm859_vm1 = vcmp.ge.f32.partialorder %v695_v21, 0.0  ;;  %v923_v40 = vmul.f32 0.2, %v695_v21 }
 0x144   : > { %vm1247_vm2 = vcmp.lt.s32.totalorder %v2249_v57, 1024  ;;  %v982_v20 = vsel %vm854_vm0, %v674_v18, %v918_v31  ;;  %v687_v24 = vadd.f32 %v2304_v37, %v686_v13  ;;  %v698_v8 = vadd.f32 %v1907_v0, %v2304_v37 }
 0x145   : > { %v690_v22 = vadd.f32 %v2304_v37, %v689_v34  ;;  %v1628_v11 = vadd.f32 %v1627_v19, %v1565_v5  ;;  %1046 = vst [vmem:[%s2364_s20 + $0xc8] sm:$0xff] %v982_v20  ;;  %v1433_v43 = vsel %vm1241_vm5, %v982_v20, 0.0  ;;  %v987_v56 = vsel %vm859_vm1, %v695_v21, %v923_v40  ;;  %v2913_v20 = vld [vmem:[#allocation4_spill] sm:$0xff] }
 0x146   : > { %v990_v39 = vsel %vm862_vm6, %v2538_v6, %v926_v32  ;;  %v1435_v26 = vsel %vm1243_vm7, %v984_v3, 0.0  ;;  %v1496_v18 = vadd.f32 %v1495_v12, %v1433_v43  ;;  %v1566_v29 = vmul.f32 %v1433_v43, %v1433_v43  ;;  %1051 = vst [vmem:[%s2364_s20 + $0xf0] sm:$0xff] %v987_v56  ;;  %v2912_v12 = vld [vmem:[#allocation3_spill] sm:$0xff] }
 0x147   : > { %vm857_vm3 = vcmp.ge.f32.partialorder %v687_v24, 0.0  ;;  %1054 = vst [vmem:[%s2364_s20 + $0x108] sm:$0xff] %v990_v39  ;;  %vm1249_vm4 = vcmp.lt.s32.totalorder %v2264_v63, 1024  ;;  %v1438_v46 = vsel %vm1246_vm9, %v987_v56, 0.0  ;;  %v921_v13 = vmul.f32 0.2, %v687_v24 }
 0x148   : > { %vm860_vm5 = vcmp.ge.f32.partialorder %v698_v8, 0.0  ;;  %v924_v21 = vmul.f32 0.2, %v698_v8  ;;  %v1497_v0 = vadd.f32 %v1496_v18, %v1434_v27  ;;  %v1629_v6 = vadd.f32 %v1628_v11, %v1566_v29 }
 0x149   : > { %vm858_vm6 = vcmp.ge.f32.partialorder %v690_v22, 0.0  ;;  %v922_v45 = vmul.f32 0.2, %v690_v22  ;;  %vm1251_vm7 = vcmp.lt.s32.totalorder %v2261_v62, 1024  ;;  %v985_v3 = vsel %vm857_vm3, %v687_v24, %v921_v13 }
 0x14a   : > { %v988_v32 = vsel %vm860_vm5, %v698_v8, %v924_v21  ;;  %v2639_v5 = vsel %vm1250_vm12, %v2381_v28, 0.0  ;;  %v727_v31 = vadd.f32 %v2911_v47, %v2304_v37  ;;  %v1568_v34 = vmul.f32 %v1435_v26, %v1435_v26  ;;  %1049 = vst [vmem:[%s2364_s20 + $0xe0] sm:$0xff] %v985_v3  ;;  %v2916_v21 = vld [vmem:[#allocation27_spill] sm:$0xff] }
 0x14b   : > { %v1630_v43 = vadd.f32 %v1629_v6, %v1567_v1  ;;  %v1436_v27 = vsel %vm1244_vm13, %v985_v3, 0.0  ;;  %v1498_v11 = vadd.f32 %v1497_v0, %v1435_v26  ;;  %1052 = vst [vmem:[%s2364_s20 + $0xf8] sm:$0xff] %v988_v32  ;;  %vm1254_vm8 = vcmp.lt.s32.totalorder %v2912_v12, 1024  ;;  %v2914_v26 = vld [vmem:[#allocation25_spill] sm:$0xff] }
 0x14c   : > { %v1571_v19 = vmul.f32 %v1438_v46, %v1438_v46  ;;  %v1569_v40 = vmul.f32 %v1436_v27, %v1436_v27  ;;  %v986_v60 = vsel %vm858_vm6, %v690_v22, %v922_v45  ;;  %v1440_v28 = vsel %vm1248_vm14, %v2434_v25, 0.0  ;;  %v2915_v22 = vld [vmem:[#allocation26_spill] sm:$0xff] }
 0x14d   : > { %vm1252_vm9 = vcmp.lt.s32.totalorder %v2913_v20, 1024  ;;  %v1499_v24 = vadd.f32 %v1498_v11, %v1436_v27  ;;  %v1631_v1 = vadd.f32 %v1630_v43, %v1568_v34  ;;  %1050 = vst [vmem:[%s2364_s20 + $0xe8] sm:$0xff] %v986_v60  ;;  %v1437_v49 = vsel %vm1245_vm15, %v986_v60, 0.0  ;;  %v2918_v43 = vld [vmem:[#allocation5_spill] sm:$0xff] }
 0x14e   : > { %vm867_vm10 = vcmp.ge.f32.partialorder %v727_v31, 0.0  ;;  %v1570_v8 = vmul.f32 %v1437_v49, %v1437_v49  ;;  %v931_v56 = vmul.f32 0.2, %v727_v31  ;;  %v719_v18 = vadd.f32 %v2304_v37, %v2914_v26 }
 0x14f   : > { %v730_v29 = vadd.f32 %v2915_v22, %v2304_v37  ;;  %v1632_v61 = vadd.f32 %v1631_v1, %v1569_v40  ;;  %v1439_v25 = vsel %vm1247_vm2, %v988_v32, 0.0  ;;  %v1500_v13 = vadd.f32 %v1499_v24, %v1437_v49  ;;  %v2919_v24 = vld [vmem:[#allocation7_spill] sm:$0xff] }
 0x150   : > { %v722_v0 = vadd.f32 %v2304_v37, %v2916_v21  ;;  %vm1253_vm11 = vcmp.lt.s32.totalorder %v2917_v58, 1024  ;;  %v995_v6 = vsel %vm867_vm10, %v727_v31, %v931_v56  ;;  %vm865_vm12 = vcmp.ge.f32.partialorder %v719_v18, 0.0  ;;  %v2924_v58 = vld [vmem:[#allocation12_spill] sm:$0xff] }
 0x151   : > { %v929_v45 = vmul.f32 0.2, %v719_v18  ;;  %vm868_vm13 = vcmp.ge.f32.partialorder %v730_v29, 0.0  ;;  %v1501_v3 = vadd.f32 %v1500_v13, %v1438_v46  ;;  %v1633_v47 = vadd.f32 %v1632_v61, %v1570_v8  ;;  %1059 = vst [vmem:[%s2364_s20 + $0x130] sm:$0xff] %v995_v6 }
 0x152   : > { %v932_v34 = vmul.f32 0.2, %v730_v29  ;;  %vm1255_vm14 = vcmp.lt.s32.totalorder %v2918_v43, 1024  ;;  %v743_v57 = vadd.f32 %v2428_v55, %v2304_v37  ;;  %v1441_v32 = vsel %vm1249_vm4, %v990_v39, 0.0  ;;  %v2920_v39 = vld [vmem:[#allocation8_spill] sm:$0xff] }
 0x153   : > { %v993_v27 = vsel %vm865_vm12, %v719_v18, %v929_v45  ;;  %vm866_vm15 = vcmp.ge.f32.partialorder %v722_v0, 0.0  ;;  %v930_v31 = vmul.f32 0.2, %v722_v0  ;;  %v1572_v11 = vmul.f32 %v1439_v25, %v1439_v25 }
 0x154   : > { %v1634_v40 = vadd.f32 %v1633_v47, %v1571_v19  ;;  %v1502_v60 = vadd.f32 %v1501_v3, %v1439_v25  ;;  %1057 = vst [vmem:[%s2364_s20 + $0x120] sm:$0xff] %v993_v27  ;;  %v996_v46 = vsel %vm868_vm13, %v730_v29, %v932_v34  ;;  %vm1258_vm0 = vcmp.lt.s32.totalorder %v2919_v24, 1024  ;;  %v2921_v25 = vld [vmem:[#allocation10_spill] sm:$0xff] }
 0x155   : > { %v1575_v1 = vmul.f32 %v2639_v5, %v2639_v5  ;;  %v1573_v49 = vmul.f32 %v1440_v28, %v1440_v28  ;;  %v1443_v63 = vsel %vm1251_vm7, %v2494_v53, 0.0  ;;  %1060 = vst [vmem:[%s2364_s20 + $0x138] sm:$0xff] %v996_v46  ;;  %v994_v55 = vsel %vm866_vm15, %v722_v0, %v930_v31  ;;  %v2922_v0 = vld [vmem:[#allocation9_spill] sm:$0xff] }
 0x156   : > { %vm1256_vm1 = vcmp.lt.s32.totalorder %v2920_v39, 1024  ;;  %v1503_v8 = vadd.f32 %v1502_v60, %v1440_v28  ;;  %v1635_v56 = vadd.f32 %v1634_v40, %v1572_v11  ;;  %v1574_v19 = vmul.f32 %v1441_v32, %v1441_v32  ;;  %1058 = vst [vmem:[%s2364_s20 + $0x128] sm:$0xff] %v994_v55 }
 0x157   : > { %vm871_vm2 = vcmp.ge.f32.partialorder %v743_v57, 0.0  ;;  %v1446_v26 = vsel %vm1254_vm8, %v995_v6, 0.0  ;;  %v935_v18 = vmul.f32 0.2, %v743_v57  ;;  %v735_v22 = vadd.f32 %v2304_v37, %v2440_v35 }
 0x158   : > { %v746_v62 = vadd.f32 %v2449_v2, %v2304_v37  ;;  %v1636_v53 = vadd.f32 %v1635_v56, %v1573_v49  ;;  %v1504_v29 = vadd.f32 %v1503_v8, %v1441_v32  ;;  %v1444_v28 = vsel %vm1252_vm9, %v993_v27, 0.0  ;;  %v2717_v56 = vld [vmem:[%s2854_s2] ss:$0 sm:$0xff] }
 0x159   : > { %v738_v61 = vadd.f32 %v2304_v37, %v2453_v36  ;;  %vm1257_vm3 = vcmp.lt.s32.totalorder %v2921_v25, 1024  ;;  %v999_v12 = vsel %vm871_vm2, %v743_v57, %v935_v18  ;;  %vm869_vm4 = vcmp.ge.f32.partialorder %v735_v22, 0.0  ;;  %v2923_v57 = vld [vmem:[#allocation11_spill] sm:$0xff] }
 0x15a   : > { %v933_v13 = vmul.f32 0.2, %v735_v22  ;;  %vm872_vm5 = vcmp.ge.f32.partialorder %v746_v62, 0.0  ;;  %v1505_v35 = vadd.f32 %v1504_v29, %v2639_v5  ;;  %v1637_v21 = vadd.f32 %v1636_v53, %v1574_v19  ;;  %1063 = vst [vmem:[%s2364_s20 + $0x150] sm:$0xff] %v999_v12 }
 0x15b   : > { %v936_v2 = vmul.f32 0.2, %v746_v62  ;;  %vm1259_vm6 = vcmp.lt.s32.totalorder %v2922_v0, 1024  ;;  %v759_v20 = vadd.f32 %v2468_v9, %v2304_v37  ;;  %v1445_v36 = vsel %vm1253_vm11, %v994_v55, 0.0 }
 0x15c   : > { %v997_v6 = vsel %vm869_vm4, %v735_v22, %v933_v13  ;;  %vm870_vm7 = vcmp.ge.f32.partialorder %v738_v61, 0.0  ;;  %v934_v45 = vmul.f32 0.2, %v738_v61  ;;  %v1576_v3 = vmul.f32 %v1443_v63, %v1443_v63 }
 0x15d   : > { %v1638_v47 = vadd.f32 %v1637_v21, %v1575_v1  ;;  %v1506_v34 = vadd.f32 %v1505_v35, %v1443_v63  ;;  %1061 = vst [vmem:[%s2364_s20 + $0x140] sm:$0xff] %v997_v6  ;;  %v1000_v5 = vsel %vm872_vm5, %v746_v62, %v936_v2  ;;  %vm1262_vm8 = vcmp.lt.s32.totalorder %v2923_v57, 1024  ;;  %v2927_v21 = vld [vmem:[#allocation15_spill] sm:$0xff] }
 0x15e   : > { %v1579_v32 = vmul.f32 %v1446_v26, %v1446_v26  ;;  %v1577_v27 = vmul.f32 %v1444_v28, %v1444_v28  ;;  %v1447_v31 = vsel %vm1255_vm14, %v996_v46, 0.0  ;;  %1064 = vst [vmem:[%s2364_s20 + $0x158] sm:$0xff] %v1000_v5  ;;  %v998_v9 = vsel %vm870_vm7, %v738_v61, %v934_v45 }
 0x15f   : > { %vm1260_vm9 = vcmp.lt.s32.totalorder %v2924_v58, 1024  ;;  %v1507_v11 = vadd.f32 %v1506_v34, %v1444_v28  ;;  %v1639_v40 = vadd.f32 %v1638_v47, %v1576_v3  ;;  %v1578_v60 = vmul.f32 %v1445_v36, %v1445_v36  ;;  %1062 = vst [vmem:[%s2364_s20 + $0x148] sm:$0xff] %v998_v9 }
 0x160   : > { %vm875_vm10 = vcmp.ge.f32.partialorder %v759_v20, 0.0  ;;  %v1450_v1 = vsel %vm1258_vm0, %v999_v12, 0.0  ;;  %v939_v49 = vmul.f32 0.2, %v759_v20  ;;  %v751_v63 = vadd.f32 %v2304_v37, %v2474_v7  ;;  %v2925_v7 = vld [vmem:[#allocation14_spill] sm:$0xff] }
 0x161   : > { %v762_v43 = vadd.f32 %v2481_v50, %v2304_v37  ;;  %v1640_v46 = vadd.f32 %v1639_v40, %v1577_v27  ;;  %v1508_v55 = vadd.f32 %v1507_v11, %v1445_v36  ;;  %v1448_v8 = vsel %vm1256_vm1, %v997_v6, 0.0  ;;  %v2929_v11 = vld [vmem:[#allocation18_spill] sm:$0xff] }
 0x162   : > { %v754_v24 = vadd.f32 %v2717_v56, %v2486_v51  ;;  %v1003_v19 = vsel %vm875_vm10, %v759_v20, %v939_v49  ;;  %vm873_vm11 = vcmp.ge.f32.partialorder %v751_v63, 0.0  ;;  %v937_v18 = vmul.f32 0.2, %v751_v63  ;;  %v2926_v51 = vld [vmem:[#allocation13_spill] sm:$0xff] }
 0x163   : > { %vm876_vm12 = vcmp.ge.f32.partialorder %v762_v43, 0.0  ;;  %vm1261_vm13 = vcmp.lt.s32.totalorder %v2925_v7, 1024  ;;  %v1509_v37 = vadd.f32 %v1508_v55, %v1446_v26  ;;  %v1641_v50 = vadd.f32 %v1640_v46, %v1578_v60  ;;  %1067 = vst [vmem:[%s2364_s20 + $0x170] sm:$0xff] %v1003_v19  ;;  %v2930_v46 = vld [vmem:[#allocation17_spill] sm:$0xff] }
 0x164   : > { %v940_v39 = vmul.f32 0.2, %v762_v43  ;;  %v775_v22 = vadd.f32 %v2717_v56, %v2507_v48  ;;  %v1449_v62 = vsel %vm1257_vm3, %v998_v9, 0.0  ;;  %v1001_v53 = vsel %vm873_vm11, %v751_v63, %v937_v18 }
 0x165   : > { %vm1263_vm14 = vcmp.lt.s32.totalorder %v2926_v51, 1024  ;;  %vm874_vm15 = vcmp.ge.f32.partialorder %v754_v24, 0.0  ;;  %v938_v29 = vmul.f32 0.2, %v754_v24  ;;  %v1580_v28 = vmul.f32 %v1447_v31, %v1447_v31  ;;  %1065 = vst [vmem:[%s2364_s20 + $0x160] sm:$0xff] %v1001_v53 }
 0x166   : > { %v1642_v61 = vadd.f32 %v1641_v50, %v1579_v32  ;;  %v1510_v12 = vadd.f32 %v1509_v37, %v1447_v31  ;;  %v1004_v26 = vsel %vm876_vm12, %v762_v43, %v940_v39  ;;  %v1583_v13 = vmul.f32 %v1450_v1, %v1450_v1  ;;  %v2928_v32 = vld [vmem:[#allocation16_spill] sm:$0xff] }
 0x167   : > { %v1581_v35 = vmul.f32 %v1448_v8, %v1448_v8  ;;  %v1451_v48 = vsel %vm1259_vm6, %v1000_v5, 0.0  ;;  %1068 = vst [vmem:[%s2364_s20 + $0x178] sm:$0xff] %v1004_v26  ;;  %v1002_v25 = vsel %vm874_vm15, %v754_v24, %v938_v29  ;;  %vm1266_vm0 = vcmp.lt.s32.totalorder %v2927_v21, 1024 }
 0x168   : > { %v1511_v2 = vadd.f32 %v1510_v12, %v1448_v8  ;;  %v1643_v20 = vadd.f32 %v1642_v61, %v1580_v28  ;;  %v1582_v36 = vmul.f32 %v1449_v62, %v1449_v62  ;;  %1066 = vst [vmem:[%s2364_s20 + $0x168] sm:$0xff] %v1002_v25  ;;  %vm879_vm1 = vcmp.ge.f32.partialorder %v775_v22, 0.0  ;;  %v2931_v28 = vld [vmem:[#allocation20_spill] sm:$0xff] }
 0x169   : > { %v1454_v6 = vsel %vm1262_vm8, %v1003_v19, 0.0  ;;  %v943_v45 = vmul.f32 0.2, %v775_v22  ;;  %v767_v3 = vadd.f32 %v2717_v56, %v2510_v15  ;;  %v778_v0 = vadd.f32 %v2717_v56, %v2515_v44 }
 0x16a   : > { %v1644_v47 = vadd.f32 %v1643_v20, %v1581_v35  ;;  %v1512_v34 = vadd.f32 %v1511_v2, %v1449_v62  ;;  %v1452_v5 = vsel %vm1260_vm9, %v1001_v53, 0.0  ;;  %vm1264_vm2 = vcmp.lt.s32.totalorder %v2928_v32, 1024  ;;  %v2933_v35 = vld [vmem:[#allocation22_spill] sm:$0xff] }
 0x16b   : > { %v770_v27 = vadd.f32 %v2717_v56, %v2524_v10  ;;  %v1007_v57 = vsel %vm879_vm1, %v775_v22, %v943_v45  ;;  %vm877_vm3 = vcmp.ge.f32.partialorder %v767_v3, 0.0  ;;  %v941_v31 = vmul.f32 0.2, %v767_v3  ;;  %v2934_v45 = vld [vmem:[#allocation21_spill] sm:$0xff] }
 0x16c   : > { %vm880_vm4 = vcmp.ge.f32.partialorder %v778_v0, 0.0  ;;  %v1513_v9 = vadd.f32 %v1512_v34, %v1450_v1  ;;  %v1645_v15 = vadd.f32 %v1644_v47, %v1582_v36  ;;  %1071 = vst [vmem:[%s2364_s20 + $0x190] sm:$0xff] %v1007_v57  ;;  %v944_v44 = vmul.f32 0.2, %v778_v0 }
 0x16d   : > { %vm1265_vm5 = vcmp.lt.s32.totalorder %v2929_v11, 1024  ;;  %v791_v58 = vadd.f32 %v2717_v56, %v2540_v33  ;;  %v1584_v40 = vmul.f32 %v1451_v48, %v1451_v48  ;;  %v1005_v60 = vsel %vm877_vm3, %v767_v3, %v941_v31 }
 0x16e   : > { %vm878_vm6 = vcmp.ge.f32.partialorder %v770_v27, 0.0  ;;  %v942_v10 = vmul.f32 0.2, %v770_v27  ;;  %v1646_v49 = vadd.f32 %v1645_v15, %v1583_v13  ;;  %v1514_v63 = vadd.f32 %v1513_v9, %v1451_v48  ;;  %1069 = vst [vmem:[%s2364_s20 + $0x180] sm:$0xff] %v1005_v60  ;;  %v2932_v13 = vld [vmem:[#allocation19_spill] sm:$0xff] }
 0x16f   : > { %v1453_v43 = vsel %vm1261_vm13, %v1002_v25, 0.0  ;;  %v1008_v1 = vsel %vm880_vm4, %v778_v0, %v944_v44  ;;  %vm1267_vm7 = vcmp.lt.s32.totalorder %v2930_v46, 1024  ;;  %v1587_v55 = vmul.f32 %v1454_v6, %v1454_v6 }
 0x170   : > { %v1585_v8 = vmul.f32 %v1452_v5, %v1452_v5  ;;  %1072 = vst [vmem:[%s2364_s20 + $0x198] sm:$0xff] %v1008_v1  ;;  %v1006_v24 = vsel %vm878_vm6, %v770_v27, %v942_v10  ;;  %v2756_v33 = vadd.s32 480, %v2113_v41  ;;  %v1515_v19 = vadd.f32 %v1514_v63, %v1452_v5 }
 0x171   : > { %v1647_v18 = vadd.f32 %v1646_v49, %v1584_v40  ;;  %v1455_v37 = vsel %vm1263_vm14, %v1004_v26, 0.0  ;;  %1070 = vst [vmem:[%s2364_s20 + $0x188] sm:$0xff] %v1006_v24  ;;  %vm883_vm8 = vcmp.ge.f32.partialorder %v791_v58, 0.0  ;;  %v1586_v7 = vmul.f32 %v1453_v43, %v1453_v43 }
 0x172   : > { %v947_v50 = vmul.f32 0.2, %v791_v58  ;;  %v783_v39 = vadd.f32 %v2717_v56, %v2545_v59  ;;  %v794_v22 = vadd.f32 %v2717_v56, %v2550_v14  ;;  %v1516_v53 = vadd.f32 %v1515_v19, %v1453_v43 }
 0x173   : > { %v1648_v62 = vadd.f32 %v1647_v18, %v1585_v8  ;;  %v1458_v29 = vsel %vm1266_vm0, %v1007_v57, 0.0  ;;  %vm1268_vm9 = vcmp.lt.s32.totalorder %v2931_v28, 1024  ;;  %v786_v51 = vadd.f32 %v2717_v56, %v2556_v54  ;;  %v2935_v8 = vld [vmem:[#allocation24_spill] sm:$0xff]  ;;  %v2937_v28 = vld [vmem:[#allocation30_spill] sm:$0xff] }
 0x174   : > { %v1011_v61 = vsel %vm883_vm8, %v791_v58, %v947_v50  ;;  %vm881_vm10 = vcmp.ge.f32.partialorder %v783_v39, 0.0  ;;  %v945_v12 = vmul.f32 0.2, %v783_v39  ;;  %vm884_vm11 = vcmp.ge.f32.partialorder %v794_v22, 0.0 }
 0x175   : > { %v1517_v26 = vadd.f32 %v1516_v53, %v1454_v6  ;;  %v1649_v59 = vadd.f32 %v1648_v62, %v1586_v7  ;;  %1075 = vst [vmem:[%s2364_s20 + $0x1b0] sm:$0xff] %v1011_v61  ;;  %vm1270_vm12 = vcmp.lt.s32.totalorder %v2932_v13, 1024  ;;  %v948_v14 = vmul.f32 0.2, %v794_v22 }
 0x176   : > { %vm1269_vm13 = vcmp.lt.s32.totalorder %v2933_v35, 1024  ;;  %v807_v48 = vadd.f32 %v2717_v56, %v2574_v17  ;;  %v1456_v54 = vsel %vm1264_vm2, %v1005_v60, 0.0  ;;  %v1009_v25 = vsel %vm881_vm10, %v783_v39, %v945_v12 }
 0x177   : > { %vm882_vm14 = vcmp.ge.f32.partialorder %v786_v51, 0.0  ;;  %v946_v21 = vmul.f32 0.2, %v786_v51  ;;  %v1588_v2 = vmul.f32 %v1455_v37, %v1455_v37  ;;  %v1650_v20 = vadd.f32 %v1649_v59, %v1587_v55  ;;  %1073 = vst [vmem:[%s2364_s20 + $0x1a0] sm:$0xff] %v1009_v25 }
 0x178   : > { %v1518_v36 = vadd.f32 %v1517_v26, %v1455_v37  ;;  %v1012_v6 = vsel %vm884_vm11, %v794_v22, %v948_v14  ;;  %vm1271_vm15 = vcmp.lt.s32.totalorder %v2934_v45, 1024  ;;  %v1591_v3 = vmul.f32 %v1458_v29, %v1458_v29  ;;  %v2936_v37 = vld [vmem:[#allocation2_spill] sm:$0xff]  ;;  %v2939_v45 = vld [vmem:[#allocation28_spill] sm:$0xff] }
 0x179   : > { %v1457_v0 = vsel %vm1265_vm5, %v1006_v24, 0.0  ;;  %1076 = vst [vmem:[%s2364_s20 + $0x1b8] sm:$0xff] %v1012_v6  ;;  %v1010_v17 = vsel %vm882_vm14, %v786_v51, %v946_v21  ;;  %v2784_v47 = vadd.s32 488, %v2113_v41  ;;  %v1589_v5 = vmul.f32 %v1456_v54, %v1456_v54 }
 0x17a   : > { %v1519_v34 = vadd.f32 %v1518_v36, %v1456_v54  ;;  %v1651_v32 = vadd.f32 %v1650_v20, %v1588_v2  ;;  %1074 = vst [vmem:[%s2364_s20 + $0x1a8] sm:$0xff] %v1010_v17  ;;  %vm887_vm0 = vcmp.ge.f32.partialorder %v807_v48, 0.0  ;;  %v1459_v27 = vsel %vm1267_vm7, %v1008_v1, 0.0 }
 0x17b   : > { %v951_v57 = vmul.f32 0.2, %v807_v48  ;;  %v799_v31 = vadd.f32 %v2717_v56, %v2576_v16  ;;  %v810_v9 = vadd.f32 %v2717_v56, %v2579_v23  ;;  %v1590_v11 = vmul.f32 %v1457_v0, %v1457_v0 }
 0x17c   : > { %v1652_v15 = vadd.f32 %v1651_v32, %v1589_v5  ;;  %v1520_v44 = vadd.f32 %v1519_v34, %v1457_v0  ;;  %vm1272_vm1 = vcmp.lt.s32.totalorder %v2421_v4, 1024  ;;  %v802_v58 = vadd.f32 %v2717_v56, %v2585_v42 }
 0x17d   : > { %v2796_v40 = vsel %vm887_vm0, %v807_v48, %v951_v57  ;;  %vm885_vm2 = vcmp.ge.f32.partialorder %v799_v31, 0.0  ;;  %v949_v60 = vmul.f32 0.2, %v799_v31  ;;  %vm888_vm3 = vcmp.ge.f32.partialorder %v810_v9, 0.0  ;;  %v2940_v57 = vld [vmem:[#allocation29_spill] sm:$0xff] }
 0x17e   : > { %v1521_v10 = vadd.f32 %v1520_v44, %v1458_v29  ;;  %v1653_v49 = vadd.f32 %v1652_v15, %v1590_v11  ;;  %1079 = vst [vmem:[%s2364_s20 + $0x1d0] sm:$0xff] %v2796_v40  ;;  %v952_v16 = vmul.f32 0.2, %v810_v9  ;;  %vm1273_vm4 = vcmp.lt.s32.totalorder %v2498_v52, 1024 }
 0x17f   : > { %v823_v23 = vadd.f32 %v2717_v56, %v2602_v30  ;;  %v1460_v42 = vsel %vm1268_vm9, %v1009_v25, 0.0  ;;  %v1013_v63 = vsel %vm885_vm2, %v799_v31, %v949_v60  ;;  %vm886_vm5 = vcmp.ge.f32.partialorder %v802_v58, 0.0 }
 0x180   : > { %v950_v43 = vmul.f32 0.2, %v802_v58  ;;  %v1592_v1 = vmul.f32 %v1459_v27, %v1459_v27  ;;  %v1654_v46 = vadd.f32 %v1653_v49, %v1591_v3  ;;  %v1522_v55 = vadd.f32 %v1521_v10, %v1459_v27  ;;  %1077 = vst [vmem:[%s2364_s20 + $0x1c0] sm:$0xff] %v1013_v63 }
 0x181   : > { %vm1274_vm6 = vcmp.lt.s32.totalorder %v2935_v8, 1024  ;;  %v1016_v24 = vsel %vm888_vm3, %v810_v9, %v952_v16  ;;  %v1462_v19 = vsel %vm1270_vm12, %v1011_v61, 0.0  ;;  %v1461_v30 = vsel %vm1269_vm13, %v1010_v17, 0.0 }
 0x182   : > { %1080 = vst [vmem:[%s2364_s20 + $0x1d8] sm:$0xff] %v1016_v24  ;;  %v1014_v18 = vsel %vm886_vm5, %v802_v58, %v950_v43  ;;  %v1212_v7 = vadd.s32 %v2936_v37, %v2756_v33  ;;  %v1523_v50 = vadd.f32 %v1522_v55, %v1460_v42  ;;  %v1593_v39 = vmul.f32 %v1460_v42, %v1460_v42  ;;  %v2938_v33 = vld [vmem:[#allocation31_spill] sm:$0xff] }
 0x183   : > { %v1655_v22 = vadd.f32 %v1654_v46, %v1592_v1  ;;  %1078 = vst [vmem:[%s2364_s20 + $0x1c8] sm:$0xff] %v1014_v18  ;;  %vm891_vm7 = vcmp.ge.f32.partialorder %v823_v23, 0.0  ;;  %v1463_v62 = vsel %vm1271_vm15, %v1012_v6, 0.0  ;;  %v955_v53 = vmul.f32 0.2, %v823_v23 }
 0x184   : > { %v815_v29 = vadd.f32 %v2717_v56, %v2607_v38  ;;  %v826_v51 = vadd.f32 %v2717_v56, %v2937_v28  ;;  %v1524_v12 = vadd.f32 %v1523_v50, %v1461_v30  ;;  %v1594_v26 = vmul.f32 %v1461_v30, %v1461_v30 }
 0x185   : > { %v1656_v61 = vadd.f32 %v1655_v22, %v1593_v39  ;;  %v818_v59 = vadd.f32 %v2717_v56, %v2938_v33  ;;  %v1019_v13 = vsel %vm891_vm7, %v823_v23, %v955_v53  ;;  %v1595_v35 = vmul.f32 %v1462_v19, %v1462_v19 }
 0x186   : > { %vm889_vm8 = vcmp.ge.f32.partialorder %v815_v29, 0.0  ;;  %v953_v14 = vmul.f32 0.2, %v815_v29  ;;  %vm892_vm9 = vcmp.ge.f32.partialorder %v826_v51, 0.0  ;;  %v1525_v48 = vadd.f32 %v1524_v12, %v1462_v19  ;;  %1083 = vst [vmem:[%s2364_s20 + $0x1f0] sm:$0xff] %v1019_v13 }
 0x187   : > { %v1657_v54 = vadd.f32 %v1656_v61, %v1594_v26  ;;  %v956_v38 = vmul.f32 0.2, %v826_v51  ;;  %v1464_v25 = vsel %vm1272_vm1, %v1013_v63, 0.0  ;;  %vm890_vm10 = vcmp.ge.f32.partialorder %v818_v59, 0.0 }
 0x188   : > { %v1017_v21 = vsel %vm889_vm8, %v815_v29, %v953_v14  ;;  %v954_v2 = vmul.f32 0.2, %v818_v59  ;;  %v1596_v20 = vmul.f32 %v1463_v62, %v1463_v62  ;;  %v1526_v36 = vadd.f32 %v1525_v48, %v1463_v62 }
 0x189   : > { %v1658_v56 = vadd.f32 %v1657_v54, %v1595_v35  ;;  %1081 = vst [vmem:[%s2364_s20 + $0x1e0] sm:$0xff] %v1017_v21  ;;  %v1020_v6 = vsel %vm892_vm9, %v826_v51, %v956_v38  ;;  %vm1275_vm11 = vcmp.lt.s32.totalorder %v2939_v45, 1024  ;;  %v1465_v3 = vsel %vm1273_vm4, %v1014_v18, 0.0 }
 0x18a   : > { %1084 = vst [vmem:[%s2364_s20 + $0x1f8] sm:$0xff] %v1020_v6  ;;  %v1149_v0 = vadd.s32 504, %v2113_v41  ;;  %v1018_v17 = vsel %vm890_vm10, %v818_v59, %v954_v2  ;;  %v1527_v4 = vadd.f32 %v1526_v36, %v1464_v25  ;;  %v1597_v34 = vmul.f32 %v1464_v25, %v1464_v25 }
 0x18b   : > { %v1659_v5 = vadd.f32 %v1658_v56, %v1596_v20  ;;  %1082 = vst [vmem:[%s2364_s20 + $0x1e8] sm:$0xff] %v1018_v17  ;;  %v1213_v32 = vadd.s32 %v2936_v37, %v2784_v47  ;;  %v1466_v27 = vsel %vm1274_vm6, %v2796_v40, 0.0  ;;  %v1214_v31 = vadd.s32 %v2936_v37, %v2940_v57 }
 0x18c   : > { %v1528_v9 = vadd.f32 %v1527_v4, %v1465_v3  ;;  %v1598_v15 = vmul.f32 %v1465_v3, %v1465_v3  ;;  %vm1276_vm12 = vcmp.lt.s32.totalorder %v1212_v7, 1024  ;;  %v1467_v41 = vsel %vm1275_vm11, %v1016_v24, 0.0 }
 0x18d   : > { %v1660_v52 = vadd.f32 %v1659_v5, %v1597_v34  ;;  %v1215_v44 = vadd.s32 %v2936_v37, %v1149_v0  ;;  %v1599_v11 = vmul.f32 %v1466_v27, %v1466_v27  ;;  %vm1277_vm13 = vcmp.lt.s32.totalorder %v1213_v32, 1024 }
 0x18e   : > { %v1529_v58 = vadd.f32 %v1528_v9, %v1466_v27  ;;  %v1468_v47 = vsel %vm1276_vm12, %v1017_v21, 0.0  ;;  %v1600_v10 = vmul.f32 %v1467_v41, %v1467_v41  ;;  %vm1278_vm14 = vcmp.lt.s32.totalorder %v1214_v31, 1024 }
 0x18f   : > { %v1661_v60 = vadd.f32 %v1660_v52, %v1598_v15  ;;  %v1469_v16 = vsel %vm1277_vm13, %v1018_v17, 0.0  ;;  %v1601_v42 = vmul.f32 %v1468_v47, %v1468_v47  ;;  %vm1279_vm15 = vcmp.lt.s32.totalorder %v1215_v44, 1024 }
 0x190   : > { %v1530_v40 = vadd.f32 %v1529_v58, %v1467_v41  ;;  %v1470_v43 = vsel %vm1278_vm14, %v1019_v13, 0.0  ;;  %v1602_v55 = vmul.f32 %v1469_v16, %v1469_v16  ;;  %v1471_v8 = vsel %vm1279_vm15, %v1020_v6, 0.0 }
 0x191   : > { %v1662_v49 = vadd.f32 %v1661_v60, %v1599_v11  ;;  %v1603_v24 = vmul.f32 %v1470_v43, %v1470_v43  ;;  %v1604_v18 = vmul.f32 %v1471_v8, %v1471_v8  ;;  %vm1674_vm0 = vcmask 1040384  }
 0x192   : > { %v1531_v23 = vadd.f32 %v1530_v40, %v1468_v47  ;;  %vm1676_vm1 = vcmask 1041408  }
 0x193   : > { %v1663_v63 = vadd.f32 %v1662_v49, %v1600_v10 }
 0x194   : > { %v1532_v46 = vadd.f32 %v1531_v23, %v1469_v16 }
 0x195   : > { %v1664_v1 = vadd.f32 %v1663_v63, %v1601_v42 }
 0x196   : > { %v1533_v19 = vadd.f32 %v1532_v46, %v1470_v43 }
 0x197   : > { %v1665_v30 = vadd.f32 %v1664_v1, %v1602_v55 }
 0x198   : > { %v1534_v37 = vadd.f32 %v1533_v19, %v1471_v8 }
 0x199   : > { %v1666_v7 = vadd.f32 %v1665_v30, %v1603_v24 }
 0x19a   : > { %v1535_v50 = vrot.slane %v1534_v37, 4 }
 0x19b   : > { %v1667_v39 = vadd.f32 %v1666_v7, %v1604_v18 }
 0x19c   : > { %v1536_v22 = vadd.f32 %v1535_v50, %v1534_v37 }
 0x19d   : > { %v1668_v62 = vrot.slane %v1667_v39, 4 }
 0x19e   : > { %v1537_v53 = vrot.slane %v1536_v22, 2 }
 0x19f   : > { %v1669_v29 = vadd.f32 %v1668_v62, %v1667_v39 }
 0x1a0   : > { %v1538_v28 = vadd.f32 %v1537_v53, %v1536_v22 }
 0x1a1   : > { %v1670_v51 = vrot.slane %v1669_v29, 2 }
 0x1a2   : > { %v1539_v61 = vrot.slane %v1538_v28, 1 }
 0x1a3   : > { %v1671_v12 = vadd.f32 %v1670_v51, %v1669_v29 }
 0x1a4   : > { %v1540_v33 = vadd.f32 %v1539_v61, %v1538_v28 }
 0x1a5   : > { %v1672_v26 = vrot.slane %v1671_v12, 1 }
 0x1a7   : > { %v1673_v59 = vadd.f32 %v1672_v26, %v1671_v12 }
 0x1a9   : > { %v1675_v13 = vsel %vm1674_vm0, %v1540_v33, %v1673_v59 }
 0x1aa   : > { %v1677_v14 = vsel %vm1676_vm1, %v1675_v13, 0.0 }
 0x1ab   : > { %1678 = vst [vmem:[%s211_s26] sm:$0xff] %v1677_v14 }
 0x1ac PF: > { %s15_s15 = sadd.s32 1, %s2011_s15  }
 0x1ad   : > { %p12_p5 = scmp.ge.s32.totalorder %s15_s15, 4  }
 0x1af   :  { %14 = sbr.rel (!%p12_p5) target bundleno = 1 (0x1), region = 74 }

</bundles_post_ra>
